<compile_context>
chip_gen: v7x
topology: tpu7x:2x2x1
jax: 0.10.0
libtpu: 0.0.40
codegen_flags: <defaults>
</compile_context>

<pallas_src>
import functools

import jax
import jax.numpy as jnp
from jax.experimental import pallas as pl
from jax.experimental.pallas import tpu as pltpu


def fcn_kernel(x_ref, w1_ref, b1_ref, w2_ref, b2_ref, w3_ref, b3_ref, o_ref):
    """One batch tile of: y = x + L3(relu(L2(L1(x)))) with bf16 MXU operands."""
    x = x_ref[...]                                     # (tb, D) f32, residual path
    x_bf = x.astype(jnp.bfloat16)                      # MXU operand

    # input_layer: Linear(D -> H0), no activation.
    h = jnp.dot(x_bf, w1_ref[...], preferred_element_type=jnp.float32)
    h = h + b1_ref[...]

    # layers[0]: Linear(H0 -> H1); layers[1]: ReLU.
    h = jnp.dot(h.astype(jnp.bfloat16), w2_ref[...],
                preferred_element_type=jnp.float32)
    h = jnp.maximum(h + b2_ref[...], 0.0)

    # layers[2]: Linear(H1 -> D).
    h = jnp.dot(h.astype(jnp.bfloat16), w3_ref[...],
                preferred_element_type=jnp.float32)

    # residual; b3 folded into the same elementwise pass.
    o_ref[...] = (x + h + b3_ref[...]).astype(o_ref.dtype)


def _weight_spec(shape, single_buffer):
    idx = lambda i: (0, 0)  # constant block: resident across the whole grid
    if single_buffer:
        return pl.BlockSpec(shape, idx, pipeline_mode=pl.Buffered(1))
    return pl.BlockSpec(shape, idx)


@functools.partial(jax.jit, static_argnames=("block_b", "single_buffer_weights"))
def _fcn_call(x, w1, b1, w2, b2, w3, b3, *, block_b, single_buffer_weights):
    B, D = x.shape
    H0 = w1.shape[1]
    H1 = w2.shape[1]
    assert w3.shape[1] == D, "output_dim must equal input_dim for the residual"

    # bf16 weights (MXU-native on v6e/v7x, halves VMEM); biases stay f32.
    w1 = w1.astype(jnp.bfloat16)
    w2 = w2.astype(jnp.bfloat16)
    w3 = w3.astype(jnp.bfloat16)
    b1 = b1.reshape(1, H0).astype(jnp.float32)
    b2 = b2.reshape(1, H1).astype(jnp.float32)
    b3 = b3.reshape(1, D).astype(jnp.float32)

    # Pad the batch so no remainder rows are silently dropped.
    n_blocks = pl.cdiv(B, block_b)
    B_pad = n_blocks * block_b
    x_p = jnp.pad(x, ((0, B_pad - B), (0, 0))) if B_pad != B else x

    # VMEM budget: single-buffered bf16 weights + double-buffered x/out tiles
    # + f32 intermediates + compiler-scratch margin. Clamp to stay within
    # v7x's 64 MiB physical VMEM.
    weight_bytes = 2 * (D * H0 + H0 * H1 + H1 * D)
    bias_bytes = 4 * (H0 + H1 + D)
    tile_bytes = 4 * block_b * D
    interm_bytes = 4 * block_b * (H0 + H1 + D)
    vmem_limit = weight_bytes + bias_bytes + 4 * tile_bytes + 2 * interm_bytes + (16 << 20)
    vmem_limit = int(min(max(vmem_limit, 32 << 20), 48 << 20))

    sb = single_buffer_weights
    out = pl.pallas_call(
        fcn_kernel,
        out_shape=jax.ShapeDtypeStruct((B_pad, D), x.dtype),
        grid_spec=pltpu.PrefetchScalarGridSpec(
            num_scalar_prefetch=0,
            grid=(n_blocks,),
            in_specs=[
                pl.BlockSpec((block_b, D), lambda i: (i, 0)),   # x tile (pipelined)
                _weight_spec((D, H0), sb),                      # W1
                _weight_spec((1, H0), sb),                      # b1
                _weight_spec((H0, H1), sb),                     # W2
                _weight_spec((1, H1), sb),                      # b2
                _weight_spec((H1, D), sb),                      # W3
                _weight_spec((1, D), sb),                       # b3
            ],
            out_specs=pl.BlockSpec((block_b, D), lambda i: (i, 0)),
        ),
        compiler_params=pltpu.CompilerParams(
            dimension_semantics=("parallel",),
            vmem_limit_bytes=vmem_limit,
        ),
    )(x_p, w1, b1, w2, b2, w3, b3)

    return out[:B] if B_pad != B else out


def _pick_block_b(B):
    # >=128 rows to fill the MXU, <=512 to bound VMEM, and keep >=2 grid steps
    # when the batch allows so the 'parallel' axis can shard across v7x's 2 TCs.
    bb = 128
    while bb * 4 <= B and bb < 512:
        bb *= 2
    return bb


def fully_connected(x, w1, b1, w2, b2, w3, b3, *, block_b=None):
    if block_b is None:
        block_b = _pick_block_b(x.shape[0])
    try:
        return _fcn_call(x, w1, b1, w2, b2, w3, b3,
                         block_b=block_b, single_buffer_weights=True)
    except Exception:
        # Fallback if this JAX version rejects Buffered(1) weight specs.
        return _fcn_call(x, w1, b1, w2, b2, w3, b3,
                         block_b=block_b, single_buffer_weights=False)


def xavier_uniform(key, fan_in, fan_out, dtype=jnp.float32):
    limit = jnp.sqrt(6.0 / (fan_in + fan_out)).astype(dtype)
    return jax.random.uniform(
        key, (fan_in, fan_out), dtype=dtype, minval=-limit, maxval=limit
    )


if __name__ == "__main__":
    # Small, shape-consistent stand-in for the original dims
    # (orig: input_dim = 50*50*n_embed_dim, hidden = [input_dim//2]*2, out = input_dim)
    batch = 256
    input_dim = 256
    hidden_dims = [input_dim // 2, input_dim // 2]   # [128, 128]
    output_dim = input_dim

    key = jax.random.PRNGKey(0)
    kx, k1, k2, k3 = jax.random.split(key, 4)

    x = jax.random.normal(kx, (batch, input_dim), dtype=jnp.float32)

    # Deterministic xavier-uniform weights, zero biases (as in init_weights).
    w1 = xavier_uniform(k1, input_dim, hidden_dims[0])
    b1 = jnp.zeros((1, hidden_dims[0]), jnp.float32)
    w2 = xavier_uniform(k2, hidden_dims[0], hidden_dims[1])
    b2 = jnp.zeros((1, hidden_dims[1]), jnp.float32)
    w3 = xavier_uniform(k3, hidden_dims[1], output_dim)
    b3 = jnp.zeros((1, output_dim), jnp.float32)

    out = fully_connected(x, w1, b1, w2, b2, w3, b3)
    out = jax.block_until_ready(out)

    # Pure-JAX f32 reference (kernel uses bf16 MXU operands with f32 accumulation,
    # so tolerances are relaxed accordingly).
    ref = x + (jnp.maximum((x @ w1 + b1) @ w2 + b2, 0.0) @ w3 + b3)
    assert out.shape == (batch, input_dim)
    max_err = float(jnp.max(jnp.abs(out - ref)))
    assert jnp.allclose(out, ref, atol=5e-2, rtol=5e-2), f"mismatch vs reference, max|err|={max_err}"

    print("KERNEL_OK")
</pallas_src>

<mosaic_0001>
module attributes {stable_mosaic.version = 11 : i64} {
  func.func @fcn_kernel(%arg0: i32, %arg1: memref<128x256xf32, #tpu.memory_space<vmem>>, %arg2: memref<256x128xbf16, #tpu.memory_space<vmem>>, %arg3: memref<1x128xf32, #tpu.memory_space<vmem>>, %arg4: memref<128x128xbf16, #tpu.memory_space<vmem>>, %arg5: memref<1x128xf32, #tpu.memory_space<vmem>>, %arg6: memref<128x256xbf16, #tpu.memory_space<vmem>>, %arg7: memref<1x256xf32, #tpu.memory_space<vmem>>, %arg8: memref<128x256xf32, #tpu.memory_space<vmem>>) attributes {dimension_semantics = [#tpu.dimension_semantics<parallel>], iteration_bounds = array<i64: 2>, scalar_prefetch = 0 : i64, scratch_operands = 0 : i64, tpu.core_type = #tpu.core_type<tc>, window_params = [{transform_indices = @transform_0, window_bounds = array<i64: 128, 256>}, {pipeline_mode = #tpu.pipeline_mode<synchronous>, transform_indices = @transform_1, window_bounds = array<i64: 256, 128>}, {pipeline_mode = #tpu.pipeline_mode<synchronous>, transform_indices = @transform_2, window_bounds = array<i64: 1, 128>}, {pipeline_mode = #tpu.pipeline_mode<synchronous>, transform_indices = @transform_3, window_bounds = array<i64: 128, 128>}, {pipeline_mode = #tpu.pipeline_mode<synchronous>, transform_indices = @transform_4, window_bounds = array<i64: 1, 128>}, {pipeline_mode = #tpu.pipeline_mode<synchronous>, transform_indices = @transform_5, window_bounds = array<i64: 128, 256>}, {pipeline_mode = #tpu.pipeline_mode<synchronous>, transform_indices = @transform_6, window_bounds = array<i64: 1, 256>}, {transform_indices = @transform_7, window_bounds = array<i64: 128, 256>}]} {
    %c0 = arith.constant 0 : index
    %c0_0 = arith.constant 0 : index
    %0 = vector.load %arg1[%c0, %c0_0] : memref<128x256xf32, #tpu.memory_space<vmem>>, vector<128x256xf32>
    %1 = arith.truncf %0 : vector<128x256xf32> to vector<128x256xbf16>
    %c0_1 = arith.constant 0 : index
    %c0_2 = arith.constant 0 : index
    %2 = vector.load %arg2[%c0_1, %c0_2] : memref<256x128xbf16, #tpu.memory_space<vmem>>, vector<256x128xbf16>
    %cst = arith.constant dense<0.000000e+00> : vector<128x128xf32>
    %3 = tpu.matmul %1, %2, %cst {dimension_numbers = #tpu.dot_dimension_numbers<[1], [0], [0], [1], [0, 0, 1, 1], [], []>} : vector<128x256xbf16>, vector<256x128xbf16>, vector<128x128xf32> -> vector<128x128xf32>
    %c0_3 = arith.constant 0 : index
    %c0_4 = arith.constant 0 : index
    %4 = vector.load %arg3[%c0_3, %c0_4] : memref<1x128xf32, #tpu.memory_space<vmem>>, vector<1x128xf32>
    %5 = vector.broadcast %4 : vector<1x128xf32> to vector<128x128xf32>
    %6 = arith.addf %3, %5 : vector<128x128xf32>
    %7 = arith.truncf %6 : vector<128x128xf32> to vector<128x128xbf16>
    %c0_5 = arith.constant 0 : index
    %c0_6 = arith.constant 0 : index
    %8 = vector.load %arg4[%c0_5, %c0_6] : memref<128x128xbf16, #tpu.memory_space<vmem>>, vector<128x128xbf16>
    %cst_7 = arith.constant dense<0.000000e+00> : vector<128x128xf32>
    %9 = tpu.matmul %7, %8, %cst_7 {dimension_numbers = #tpu.dot_dimension_numbers<[1], [0], [0], [1], [0, 0, 1, 1], [], []>} : vector<128x128xbf16>, vector<128x128xbf16>, vector<128x128xf32> -> vector<128x128xf32>
    %c0_8 = arith.constant 0 : index
    %c0_9 = arith.constant 0 : index
    %10 = vector.load %arg5[%c0_8, %c0_9] : memref<1x128xf32, #tpu.memory_space<vmem>>, vector<1x128xf32>
    %11 = vector.broadcast %10 : vector<1x128xf32> to vector<128x128xf32>
    %12 = arith.addf %9, %11 : vector<128x128xf32>
    %cst_10 = arith.constant 0.000000e+00 : f32
    %13 = vector.broadcast %cst_10 : f32 to vector<128x128xf32>
    %14 = arith.maximumf %12, %13 : vector<128x128xf32>
    %15 = arith.truncf %14 : vector<128x128xf32> to vector<128x128xbf16>
    %c0_11 = arith.constant 0 : index
    %c0_12 = arith.constant 0 : index
    %16 = vector.load %arg6[%c0_11, %c0_12] : memref<128x256xbf16, #tpu.memory_space<vmem>>, vector<128x256xbf16>
    %cst_13 = arith.constant dense<0.000000e+00> : vector<128x256xf32>
    %17 = tpu.matmul %15, %16, %cst_13 {dimension_numbers = #tpu.dot_dimension_numbers<[1], [0], [0], [1], [0, 0, 1, 1], [], []>} : vector<128x128xbf16>, vector<128x256xbf16>, vector<128x256xf32> -> vector<128x256xf32>
    %18 = arith.addf %0, %17 : vector<128x256xf32>
    %c0_14 = arith.constant 0 : index
    %c0_15 = arith.constant 0 : index
    %19 = vector.load %arg7[%c0_14, %c0_15] : memref<1x256xf32, #tpu.memory_space<vmem>>, vector<1x256xf32>
    %20 = vector.broadcast %19 : vector<1x256xf32> to vector<128x256xf32>
    %21 = arith.addf %18, %20 : vector<128x256xf32>
    %c0_16 = arith.constant 0 : index
    %c0_17 = arith.constant 0 : index
    %22 = vector.load %arg8[%c0_16, %c0_17] : memref<128x256xf32, #tpu.memory_space<vmem>>, vector<128x256xf32>
    tpu.vector_store %arg8[%c0_16, %c0_17], %21 {strides = array<i32>} : memref<128x256xf32, #tpu.memory_space<vmem>>, vector<128x256xf32>,
    return
  }
  func.func @transform_0(%arg0: i32) -> (i32, i32) {
    %c0_i32 = arith.constant 0 : i32
    %c0_i32_0 = arith.constant 0 : i32
    return %arg0, %c0_i32 : i32, i32
  }
  func.func @transform_1(%arg0: i32) -> (i32, i32) {
    %c0_i32 = arith.constant 0 : i32
    %c0_i32_0 = arith.constant 0 : i32
    %c0_i32_1 = arith.constant 0 : i32
    return %c0_i32, %c0_i32_0 : i32, i32
  }
  func.func @transform_2(%arg0: i32) -> (i32, i32) {
    %c0_i32 = arith.constant 0 : i32
    %c0_i32_0 = arith.constant 0 : i32
    %c0_i32_1 = arith.constant 0 : i32
    return %c0_i32, %c0_i32_0 : i32, i32
  }
  func.func @transform_3(%arg0: i32) -> (i32, i32) {
    %c0_i32 = arith.constant 0 : i32
    %c0_i32_0 = arith.constant 0 : i32
    %c0_i32_1 = arith.constant 0 : i32
    return %c0_i32, %c0_i32_0 : i32, i32
  }
  func.func @transform_4(%arg0: i32) -> (i32, i32) {
    %c0_i32 = arith.constant 0 : i32
    %c0_i32_0 = arith.constant 0 : i32
    %c0_i32_1 = arith.constant 0 : i32
    return %c0_i32, %c0_i32_0 : i32, i32
  }
  func.func @transform_5(%arg0: i32) -> (i32, i32) {
    %c0_i32 = arith.constant 0 : i32
    %c0_i32_0 = arith.constant 0 : i32
    %c0_i32_1 = arith.constant 0 : i32
    return %c0_i32, %c0_i32_0 : i32, i32
  }
  func.func @transform_6(%arg0: i32) -> (i32, i32) {
    %c0_i32 = arith.constant 0 : i32
    %c0_i32_0 = arith.constant 0 : i32
    %c0_i32_1 = arith.constant 0 : i32
    return %c0_i32, %c0_i32_0 : i32, i32
  }
  func.func @transform_7(%arg0: i32) -> (i32, i32) {
    %c0_i32 = arith.constant 0 : i32
    %c0_i32_0 = arith.constant 0 : i32
    return %arg0, %c0_i32 : i32, i32
  }
}

module attributes {stable_mosaic.version = 11 : i64} {
  func.func @fcn_kernel(%arg0: i32, %arg1: memref<128x256xf32, #tpu.memory_space<vmem>>, %arg2: memref<256x128xbf16, #tpu.memory_space<vmem>>, %arg3: memref<1x128xf32, #tpu.memory_space<vmem>>, %arg4: memref<128x128xbf16, #tpu.memory_space<vmem>>, %arg5: memref<1x128xf32, #tpu.memory_space<vmem>>, %arg6: memref<128x256xbf16, #tpu.memory_space<vmem>>, %arg7: memref<1x256xf32, #tpu.memory_space<vmem>>, %arg8: memref<128x256xf32, #tpu.memory_space<vmem>>) attributes {dimension_semantics = [#tpu.dimension_semantics<parallel>], iteration_bounds = array<i64: 2>, scalar_prefetch = 0 : i64, scratch_operands = 0 : i64, tpu.core_type = #tpu.core_type<tc>, window_params = [{transform_indices = @transform_0, window_bounds = array<i64: 128, 256>}, {pipeline_mode = #tpu.pipeline_mode<synchronous>, transform_indices = @transform_1, window_bounds = array<i64: 256, 128>}, {pipeline_mode = #tpu.pipeline_mode<synchronous>, transform_indices = @transform_2, window_bounds = array<i64: 1, 128>}, {pipeline_mode = #tpu.pipeline_mode<synchronous>, transform_indices = @transform_3, window_bounds = array<i64: 128, 128>}, {pipeline_mode = #tpu.pipeline_mode<synchronous>, transform_indices = @transform_4, window_bounds = array<i64: 1, 128>}, {pipeline_mode = #tpu.pipeline_mode<synchronous>, transform_indices = @transform_5, window_bounds = array<i64: 128, 256>}, {pipeline_mode = #tpu.pipeline_mode<synchronous>, transform_indices = @transform_6, window_bounds = array<i64: 1, 256>}, {transform_indices = @transform_7, window_bounds = array<i64: 128, 256>}]} {
    %c0 = arith.constant 0 : index
    %c0_0 = arith.constant 0 : index
    %0 = vector.load %arg1[%c0, %c0_0] : memref<128x256xf32, #tpu.memory_space<vmem>>, vector<128x256xf32>
    %1 = arith.truncf %0 : vector<128x256xf32> to vector<128x256xbf16>
    %c0_1 = arith.constant 0 : index
    %c0_2 = arith.constant 0 : index
    %2 = vector.load %arg2[%c0_1, %c0_2] : memref<256x128xbf16, #tpu.memory_space<vmem>>, vector<256x128xbf16>
    %cst = arith.constant dense<0.000000e+00> : vector<128x128xf32>
    %3 = tpu.matmul %1, %2, %cst {dimension_numbers = #tpu.dot_dimension_numbers<[1], [0], [0], [1], [0, 0, 1, 1], [], []>} : vector<128x256xbf16>, vector<256x128xbf16>, vector<128x128xf32> -> vector<128x128xf32>
    %c0_3 = arith.constant 0 : index
    %c0_4 = arith.constant 0 : index
    %4 = vector.load %arg3[%c0_3, %c0_4] : memref<1x128xf32, #tpu.memory_space<vmem>>, vector<1x128xf32>
    %5 = vector.broadcast %4 : vector<1x128xf32> to vector<128x128xf32>
    %6 = arith.addf %3, %5 : vector<128x128xf32>
    %7 = arith.truncf %6 : vector<128x128xf32> to vector<128x128xbf16>
    %c0_5 = arith.constant 0 : index
    %c0_6 = arith.constant 0 : index
    %8 = vector.load %arg4[%c0_5, %c0_6] : memref<128x128xbf16, #tpu.memory_space<vmem>>, vector<128x128xbf16>
    %cst_7 = arith.constant dense<0.000000e+00> : vector<128x128xf32>
    %9 = tpu.matmul %7, %8, %cst_7 {dimension_numbers = #tpu.dot_dimension_numbers<[1], [0], [0], [1], [0, 0, 1, 1], [], []>} : vector<128x128xbf16>, vector<128x128xbf16>, vector<128x128xf32> -> vector<128x128xf32>
    %c0_8 = arith.constant 0 : index
    %c0_9 = arith.constant 0 : index
    %10 = vector.load %arg5[%c0_8, %c0_9] : memref<1x128xf32, #tpu.memory_space<vmem>>, vector<1x128xf32>
    %11 = vector.broadcast %10 : vector<1x128xf32> to vector<128x128xf32>
    %12 = arith.addf %9, %11 : vector<128x128xf32>
    %cst_10 = arith.constant 0.000000e+00 : f32
    %13 = vector.broadcast %cst_10 : f32 to vector<128x128xf32>
    %14 = arith.maximumf %12, %13 : vector<128x128xf32>
    %15 = arith.truncf %14 : vector<128x128xf32> to vector<128x128xbf16>
    %c0_11 = arith.constant 0 : index
    %c0_12 = arith.constant 0 : index
    %16 = vector.load %arg6[%c0_11, %c0_12] : memref<128x256xbf16, #tpu.memory_space<vmem>>, vector<128x256xbf16>
    %cst_13 = arith.constant dense<0.000000e+00> : vector<128x256xf32>
    %17 = tpu.matmul %15, %16, %cst_13 {dimension_numbers = #tpu.dot_dimension_numbers<[1], [0], [0], [1], [0, 0, 1, 1], [], []>} : vector<128x128xbf16>, vector<128x256xbf16>, vector<128x256xf32> -> vector<128x256xf32>
    %18 = arith.addf %0, %17 : vector<128x256xf32>
    %c0_14 = arith.constant 0 : index
    %c0_15 = arith.constant 0 : index
    %19 = vector.load %arg7[%c0_14, %c0_15] : memref<1x256xf32, #tpu.memory_space<vmem>>, vector<1x256xf32>
    %20 = vector.broadcast %19 : vector<1x256xf32> to vector<128x256xf32>
    %21 = arith.addf %18, %20 : vector<128x256xf32>
    %c0_16 = arith.constant 0 : index
    %c0_17 = arith.constant 0 : index
    %22 = vector.load %arg8[%c0_16, %c0_17] : memref<128x256xf32, #tpu.memory_space<vmem>>, vector<128x256xf32>
    tpu.vector_store %arg8[%c0_16, %c0_17], %21 {strides = array<i32>} : memref<128x256xf32, #tpu.memory_space<vmem>>, vector<128x256xf32>,
    return
  }
  func.func @transform_0(%arg0: i32) -> (i32, i32) {
    %c0_i32 = arith.constant 0 : i32
    %c0_i32_0 = arith.constant 0 : i32
    return %arg0, %c0_i32 : i32, i32
  }
  func.func @transform_1(%arg0: i32) -> (i32, i32) {
    %c0_i32 = arith.constant 0 : i32
    %c0_i32_0 = arith.constant 0 : i32
    %c0_i32_1 = arith.constant 0 : i32
    return %c0_i32, %c0_i32_0 : i32, i32
  }
  func.func @transform_2(%arg0: i32) -> (i32, i32) {
    %c0_i32 = arith.constant 0 : i32
    %c0_i32_0 = arith.constant 0 : i32
    %c0_i32_1 = arith.constant 0 : i32
    return %c0_i32, %c0_i32_0 : i32, i32
  }
  func.func @transform_3(%arg0: i32) -> (i32, i32) {
    %c0_i32 = arith.constant 0 : i32
    %c0_i32_0 = arith.constant 0 : i32
    %c0_i32_1 = arith.constant 0 : i32
    return %c0_i32, %c0_i32_0 : i32, i32
  }
  func.func @transform_4(%arg0: i32) -> (i32, i32) {
    %c0_i32 = arith.constant 0 : i32
    %c0_i32_0 = arith.constant 0 : i32
    %c0_i32_1 = arith.constant 0 : i32
    return %c0_i32, %c0_i32_0 : i32, i32
  }
  func.func @transform_5(%arg0: i32) -> (i32, i32) {
    %c0_i32 = arith.constant 0 : i32
    %c0_i32_0 = arith.constant 0 : i32
    %c0_i32_1 = arith.constant 0 : i32
    return %c0_i32, %c0_i32_0 : i32, i32
  }
  func.func @transform_6(%arg0: i32) -> (i32, i32) {
    %c0_i32 = arith.constant 0 : i32
    %c0_i32_0 = arith.constant 0 : i32
    %c0_i32_1 = arith.constant 0 : i32
    return %c0_i32, %c0_i32_0 : i32, i32
  }
  func.func @transform_7(%arg0: i32) -> (i32, i32) {
    %c0_i32 = arith.constant 0 : i32
    %c0_i32_0 = arith.constant 0 : i32
    return %arg0, %c0_i32 : i32, i32
  }
}

</mosaic_0001>

<bundles_post_ra>
// kernel: _fcn_call.1
= control target key start
LH: loop header
LB: loop body
LE: loop exit
PB: predicated region body
PF: predicated region fallthrough
CT: control target
= control target key end

     0   :  { %12 = vsyncpa [#allocation3], 0  ;;  %s2037_s0 = inlined_call_operand.vmem [shape: f32[256,256], index: 0, kind: input, shape index: {}]   ;;  %s2038_s1 = inlined_call_operand.vmem [shape: bf16[256,128], index: 1, kind: input, shape index: {}]   ;;  %s2039_s2 = inlined_call_operand.vmem [shape: f32[1,128], index: 2, kind: input, shape index: {}]   ;;  %s2040_s3 = inlined_call_operand.vmem [shape: bf16[128,128], index: 3, kind: input, shape index: {}]   ;;  %s2041_s4 = inlined_call_operand.vmem [shape: f32[1,128], index: 4, kind: input, shape index: {}]   ;;  %s2042_s5 = inlined_call_operand.vmem [shape: bf16[128,256], index: 5, kind: input, shape index: {}]   ;;  %s2043_s6 = inlined_call_operand.vmem [shape: f32[1,256], index: 6, kind: input, shape index: {}]   ;;  %s2044_s7 = inlined_call_operand.hbm [shape: f32[256,256], index: 7, kind: output, shape index: {}]  }
   0x1   :  { %14 = vsyncpa [#allocation3 + $0x1], 0  ;;  %s1543_s24 = smov 0   ;;  %s1545_s25 = smov 0  }
   0x2   :  { %s1547_s26 = smov 0   ;;  %s1549_s27 = smov 0  }
   0x3 LB: > { %s1564_s28 = sadd.s32 4294967295, %s1497_s27   ;;  %s1158_s29 = sadd.s32 4294967294, %s1497_s27   ;;  %s1497_s27 = sphi %s1549_s27, %s2050_s27   ;;  %s1493_s26 = sphi %s1547_s26, %s2049_s26   ;;  %s1489_s25 = sphi %s1545_s25, %s2048_s25   ;;  %s1485_s24 = sphi %s1543_s24, %s2047_s24  }
   0x4   : > { %s1568_s30 = sadd.s32 1, %s1497_s27   ;;  %s179_s8 = sadd.s32 1, %s1493_s26 }
   0x5   : > { %s176_s9 = ssub.s32 %s1497_s27, %s1568_s30  ;;  %p189_p0 = scmp.ne.s32.totalorder %s1493_s26, %s1489_s25 }
   0x6   : > { %p177_p1 = scmp.eq.s32.totalorder %s176_s9, 0  ;;  %p190_p2 = scmp.eq.s32.totalorder %s1564_s28, 1 }
   0x7   : > { %p195_p3 = scmp.ne.s32.totalorder %s1489_s25, %s1485_s24  ;;  %p196_p4 = scmp.eq.s32.totalorder %s1158_s29, 1 }
   0x8   : > { %s1579_s10 = scalar_select %p177_p1, %s1493_s26, %s179_s8  }
   0x9   : > { %p1581_p5 = por %p190_p2, %p189_p0  ;;  %p1585_p6 = por %p196_p4, %p195_p3 }
   0xa   : > { %p1161_p7 = scmp.ge.s32.totalorder %s1497_s27, 1  ;;  %p242_p8 = scmp.lt.s32.totalorder %s1497_s27, 3 }
   0xc   : > { %p243_p9 = pnand %p1161_p7, %p242_p8 }
   0xd   : > { %v1387_v0 = vld [vmem:[%s2038_s1 + $0x40] sm:$0xff] (!%p243_p9)   ;;  %s1163_s15 = sshll.u32 (!%p243_p9), %s1564_s28, 4  ;;  %v1389_v2 = vld [vmem:[%s2038_s1 + $0x48] sm:$0xff] (!%p243_p9)   ;;  %v1391_v4 = vld [vmem:[%s2038_s1 + $0x50] sm:$0xff] (!%p243_p9)   ;;  %s272_s20 = sand.u32 (!%p243_p9), 1, %s1489_s25  }
   0xe   : > { %246 = sbr.rel (%p243_p9) target bundleno = 786 (0x312), region = 48  ;;  %v1388_v1 = vld [vmem:[%s2038_s1] sm:$0xff] (!%p243_p9)   ;;  %1217 = vmatprep.subr.bf16.mxu0 (!%p243_p9), %v1387_v0  ;;  %p276_p10 = scmp.lt.s32.totalorder (!%p243_p9), %s1163_s15, 31  ;;  %v1390_v3 = vld [vmem:[%s2038_s1 + $0x8] sm:$0xff] (!%p243_p9)   ;;  %v1392_v5 = vld [vmem:[%s2038_s1 + $0x10] sm:$0xff] (!%p243_p9)  }
   0xf   : > { %1218 = vmatpush3.bf16.msra.mxu0 (!%p243_p9), %v1388_v1  ;;  %v1393_v6 = vld [vmem:[%s2038_s1 + $0x58] sm:$0xff] (!%p243_p9)   ;;  %v1395_v8 = vld [vmem:[%s2038_s1 + $0x60] sm:$0xff] (!%p243_p9)   ;;  %v1397_v10 = vld [vmem:[%s2038_s1 + $0x68] sm:$0xff] (!%p243_p9)   ;;  %s1216_s29 = sshll.u32 (!%p243_p9), %s1564_s28, 12  ;;  %s1996_s28 = scalar_lea.sflag (!%p243_p9), [#allocation3], %s272_s20 }
  0x10   : > { %1219 = vmatprep.subr.bf16.mxu0 (!%p243_p9), %v1389_v2  ;;  %v1394_v7 = vld [vmem:[%s2038_s1 + $0x18] sm:$0xff] (!%p243_p9)   ;;  %v1396_v9 = vld [vmem:[%s2038_s1 + $0x20] sm:$0xff] (!%p243_p9)   ;;  %v1398_v14 = vld [vmem:[%s2038_s1 + $0x28] sm:$0xff] (!%p243_p9)   ;;  %s1500_s17 = smov (!%p243_p9), [#allocation2]  }
  0x11   : > { %v1399_v15 = vld [vmem:[%s2038_s1 + $0x70] sm:$0xff] (!%p243_p9)   ;;  %v1401_v17 = vld [vmem:[%s2038_s1 + $0x78] sm:$0xff] (!%p243_p9)   ;;  %v1403_v23 = vld [vmem:[%s2040_s3] sm:$0xff] (!%p243_p9)   ;;  %s1439_s18 = sshll.u32 (!%p243_p9), %s1500_s17, 4  ;;  %s1440_s18 = int_to_ptr.vmem [resolvable:$false] %s1439_s18 }
  0x12   : > { %v1400_v16 = vld [vmem:[%s2038_s1 + $0x30] sm:$0xff] (!%p243_p9)   ;;  %v1402_v18 = vld [vmem:[%s2038_s1 + $0x38] sm:$0xff] (!%p243_p9)   ;;  %v1404_v24 = vld [vmem:[%s2040_s3 + $0x8] sm:$0xff] (!%p243_p9)   ;;  %1297 = vmatprep.subr.bf16.mxu1 (!%p243_p9), %v1403_v23  ;;  %s1441_s19 = scalar_lea.vmem (!%p243_p9), %s1440_s18, 8192 }
  0x13   : > { %1220 = vmatpush3.bf16.msra.mxu0 (!%p243_p9), %v1390_v3  ;;  %1298 = vmatpush3.bf16.msra.mxu1 (!%p243_p9), %v1403_v23  ;;  %v1405_v26 = vld [vmem:[%s2040_s3 + $0x10] sm:$0xff] (!%p243_p9)   ;;  %v1406_v30 = vld [vmem:[%s2040_s3 + $0x18] sm:$0xff] (!%p243_p9)   ;;  %v1423_v23 = vld [vmem:[%s2042_s5 + $0x40] ss:$8 sps:$4 sm:$0xff] (!%p243_p9)  }
  0x14   : > { %1221 = vmatprep.subr.bf16.mxu0 (!%p243_p9), %v1391_v4  ;;  %1299 = vmatprep.subr.bf16.mxu1 (!%p243_p9), %v1404_v24  ;;  %v1407_v4 = vld [vmem:[%s2040_s3 + $0x20] sm:$0xff] (!%p243_p9)  }
  0x15   : > { %s2052_s15 = smov (!%p276_p10, %s1163_s15), 31 }
  0x16   : > { %s1214_s14 = sshll.u32 %s2052_s15, 4  ;;  %s1162_s15 = sshll.u32 %s272_s20, 8 }
  0x17   : > { %1222 = vmatpush3.bf16.msra.mxu0 %v1392_v5  ;;  %s1622_s22 = scalar_lea.vmem %s2037_s0, %s1214_s14  ;;  %1300 = vmatpush3.bf16.msra.mxu1 %v1404_v24  ;;  %v1408_v5 = vld [vmem:[%s2040_s3 + $0x28] sm:$0xff]   ;;  %v1428_v24 = vld [vmem:[%s2042_s5 + $0x54] ss:$8 sps:$4 sm:$0xff]   ;;  %s1986_s14 = scalar_lea.hbm %s2044_s7, %s1216_s29 }
  0x18   : > { %1223 = vmatprep.subr.bf16.mxu0 %v1393_v6  ;;  %v1631_v11 = vld [vmem:[%s1622_s22 + $0x8] sm:$0xff]  ;;  %v1634_v12 = vld [vmem:[%s1622_s22 + $0x18] sm:$0xff]  ;;  %v1654_v19 = vld [vmem:[%s1622_s22] sm:$0xff]  ;;  %1301 = vmatprep.subr.bf16.mxu1 %v1405_v26 }
  0x19   : > { %v317_v13 = vpack.c.bf16 %v1634_v12, %v1631_v11  ;;  %v1657_v20 = vld [vmem:[%s1622_s22 + $0x10] sm:$0xff]  ;;  %v1660_v21 = vld [vmem:[%s1622_s22 + $0x28] sm:$0xff]  ;;  %v1663_v22 = vld [vmem:[%s1622_s22 + $0x38] sm:$0xff] }
  0x1a   : > { %v316_v25 = vpack.c.bf16 %v1657_v20, %v1654_v19  ;;  %v319_v27 = vpack.c.bf16 %v1663_v22, %v1660_v21  ;;  %v1679_v28 = vld [vmem:[%s1622_s22 + $0x20] sm:$0xff]  ;;  %v1682_v29 = vld [vmem:[%s1622_s22 + $0x30] sm:$0xff]  ;;  %v1688_v31 = vld [vmem:[%s1622_s22 + $0x48] sm:$0xff] }
  0x1b   : > { %1224 = vmatpush3.bf16.msra.mxu0 %v1394_v7  ;;  %499 = vmatprep.mubr.bf16.mxu0 %v317_v13  ;;  %v1691_v32 = vld [vmem:[%s1622_s22 + $0x58] sm:$0xff]  ;;  %v318_v33 = vpack.c.bf16 %v1682_v29, %v1679_v28  ;;  %v1698_v35 = vld [vmem:[%s1622_s22 + $0x40] sm:$0xff]  ;;  %v1701_v36 = vld [vmem:[%s1622_s22 + $0x50] sm:$0xff] }
  0x1c   : > { %1225 = vmatprep.subr.bf16.mxu0 %v1395_v8  ;;  %1302 = vmatpush3.bf16.msra.mxu1 %v1405_v26  ;;  %v321_v34 = vpack.c.bf16 %v1691_v32, %v1688_v31  ;;  %v1704_v37 = vld [vmem:[%s1622_s22 + $0x68] sm:$0xff]  ;;  %v1707_v38 = vld [vmem:[%s1622_s22 + $0x78] sm:$0xff]  ;;  %v320_v39 = vpack.c.bf16 %v1701_v36, %v1698_v35  ;;  %v1714_v41 = vld [vmem:[%s1622_s22 + $0x60] sm:$0xff] }
  0x1d   : > { %1303 = vmatprep.subr.bf16.mxu1 %v1406_v30  ;;  %v323_v40 = vpack.c.bf16 %v1707_v38, %v1704_v37  ;;  %v1717_v42 = vld [vmem:[%s1622_s22 + $0x70] sm:$0xff]  ;;  %v1720_v43 = vld [vmem:[%s1622_s22 + $0x88] sm:$0xff]  ;;  %v1723_v44 = vld [vmem:[%s1622_s22 + $0x98] sm:$0xff] }
  0x1e   : > { %v322_v45 = vpack.c.bf16 %v1717_v42, %v1714_v41  ;;  %v325_v46 = vpack.c.bf16 %v1723_v44, %v1720_v43  ;;  %v1730_v47 = vld [vmem:[%s1622_s22 + $0x80] sm:$0xff]  ;;  %v1733_v48 = vld [vmem:[%s1622_s22 + $0x90] sm:$0xff]  ;;  %v1736_v49 = vld [vmem:[%s1622_s22 + $0xa8] sm:$0xff] }
  0x1f   : > { %1226 = vmatpush3.bf16.msra.mxu0 %v1396_v9  ;;  %v1739_v50 = vld [vmem:[%s1622_s22 + $0xb8] sm:$0xff]  ;;  %v324_v51 = vpack.c.bf16 %v1733_v48, %v1730_v47  ;;  %v1746_v53 = vld [vmem:[%s1622_s22 + $0xa0] sm:$0xff]  ;;  %v1749_v54 = vld [vmem:[%s1622_s22 + $0xb0] sm:$0xff] }
  0x20   : > { %1227 = vmatprep.subr.bf16.mxu0 %v1397_v10  ;;  %1304 = vmatpush3.bf16.msra.mxu1 %v1406_v30  ;;  %v327_v52 = vpack.c.bf16 %v1739_v50, %v1736_v49  ;;  %v1752_v55 = vld [vmem:[%s1622_s22 + $0xc8] sm:$0xff]  ;;  %v1755_v56 = vld [vmem:[%s1622_s22 + $0xd8] sm:$0xff]  ;;  %v326_v57 = vpack.c.bf16 %v1749_v54, %v1746_v53  ;;  %v1762_v59 = vld [vmem:[%s1622_s22 + $0xc0] sm:$0xff] }
  0x21   : > { %v329_v58 = vpack.c.bf16 %v1755_v56, %v1752_v55  ;;  %v1765_v60 = vld [vmem:[%s1622_s22 + $0xd0] sm:$0xff]  ;;  %v1768_v61 = vld [vmem:[%s1622_s22 + $0xe8] sm:$0xff]  ;;  %v1771_v62 = vld [vmem:[%s1622_s22 + $0xf8] sm:$0xff]  ;;  %1305 = vmatprep.subr.bf16.mxu1 %v1407_v4 }
  0x22   : > { %v328_v63 = vpack.c.bf16 %v1765_v60, %v1762_v59  ;;  %v331_v0 = vpack.c.bf16 %v1771_v62, %v1768_v61  ;;  %v1778_v1 = vld [vmem:[%s1622_s22 + $0xe0] sm:$0xff]  ;;  %v1781_v2 = vld [vmem:[%s1622_s22 + $0xf0] sm:$0xff]  ;;  %v1410_v7 = vld [vmem:[%s2040_s3 + $0x38] sm:$0xff]   ;;  %s1893_s22 = scalar_lea.vmem [#allocation2], %s1162_s15 }
  0x23   : > { %1228 = vmatpush3.bf16.msra.mxu0 %v1398_v14  ;;  %v330_v3 = vpack.c.bf16 %v1781_v2, %v1778_v1  ;;  %v1409_v6 = vld [vmem:[%s2040_s3 + $0x30] sm:$0xff]   ;;  %v1411_v8 = vld [vmem:[%s2042_s5] ss:$8 sps:$4 sm:$0xff]   ;;  %v1413_v9 = vld [vmem:[%s2042_s5 + $0x4] ss:$8 sps:$4 sm:$0xff]   ;;  %s1096_s8 = sshll.u32 %s1893_s22, 4  ;;  %s1988_s8 = int_to_ptr.vmem [resolvable:$true] %s1096_s8 }
  0x24   : > { %1229 = vmatprep.subr.bf16.mxu0 %v1399_v15  ;;  %1306 = vmatpush3.bf16.msra.mxu1 %v1407_v4  ;;  %v1416_v10 = vld [vmem:[%s2042_s5 + $0x14] ss:$8 sps:$4 sm:$0xff]   ;;  %v1414_v13 = vld [vmem:[%s2042_s5 + $0x10] ss:$8 sps:$4 sm:$0xff]   ;;  %v1419_v14 = vld [vmem:[%s2042_s5 + $0x24] ss:$8 sps:$4 sm:$0xff]   ;;  %p1442_p0 = scmp.lt.s32.totalorder %s1988_s8, %s1440_s18 }
  0x25   : > { %1307 = vmatprep.subr.bf16.mxu1 %v1408_v5  ;;  %v1417_v15 = vld [vmem:[%s2042_s5 + $0x20] ss:$8 sps:$4 sm:$0xff]   ;;  %s1435_s16 = scalar_lea.vmem %s1988_s8, 4096 }
  0x26   : > { %p1436_p11 = scmp.ne.s32.totalorder %s1988_s8, %s1435_s16  ;;  %p1443_p1 = scmp.lt.s32.totalorder %s1441_s19, %s1435_s16 }
  0x27   : > { %1230 = vmatpush3.bf16.msra.mxu0 %v1400_v16  ;;  %v1422_v16 = vld [vmem:[%s2042_s5 + $0x34] ss:$8 sps:$4 sm:$0xff]  }
  0x28   : > { %1231 = vmatprep.subr.bf16.mxu0 %v1401_v17  ;;  %1308 = vmatpush3.bf16.msra.mxu1 %v1408_v5  ;;  %v1420_v17 = vld [vmem:[%s2042_s5 + $0x30] ss:$8 sps:$4 sm:$0xff]   ;;  %p1437_p12 = pnand %p1436_p11, %p1581_p5  ;;  %p1444_p2 = por %p1443_p1, %p1442_p0 }
  0x29   : > { %1309 = vmatprep.subr.bf16.mxu1 %v1409_v6 }
  0x2a   : > { %p1438_p13 = pneg %p1437_p12 }
  0x2b   : > { %1232 = vmatpush3.bf16.msra.mxu0 %v1402_v18  ;;  %v1425_v18 = vld [vmem:[%s2042_s5 + $0x44] ss:$8 sps:$4 sm:$0xff]  }
  0x2c   : > { %1310 = vmatpush3.bf16.msra.mxu1 %v1409_v6  ;;  %860 = vmatprep.subr.bf16.mxu0 %v1413_v9  ;;  %p1445_p3 = pnand %p1444_p2, %p1438_p13 }
  0x2d   : > { %1311 = vmatprep.subr.bf16.mxu1 %v1410_v7 }
  0x2e   : > { %500 = vmatmul.mubr.bf16.vlgmr.msra.gmra.mrb[0].mxu0 %v316_v25  ;;  %v1426_v25 = vld [vmem:[%s2042_s5 + $0x50] ss:$8 sps:$4 sm:$0xff]  }
  0x2f   : > { %507 = vmatprep.mubr.bf16.mxu0 %v319_v27  ;;  %861 = vmatpush1.bf16.msra.mxu0 %v1411_v8 }
  0x30   : > { %1312 = vmatpush3.bf16.msra.mxu1 %v1410_v7  ;;  %862 = vmatprep.subr.bf16.mxu0 %v1416_v10 }
  0x31   : > { %1329 = vmatprep.subr.bf16.mxu1 %v1413_v9 }
  0x33   : > { %863 = vmatpush1.bf16.msra.mxu0 %v1414_v13 }
  0x34   : > { %864 = vmatprep.subr.bf16.mxu0 %v1419_v14 }
  0x36   : > { %508 = vmatmul.mubr.bf16.gmra.mrb[4].mxu0 %v318_v33 }
  0x37   : > { %515 = vmatprep.mubr.bf16.mxu0 %v321_v34  ;;  %865 = vmatpush1.bf16.msra.mxu0 %v1417_v15 }
  0x38   : > { %866 = vmatprep.subr.bf16.mxu0 %v1422_v16 }
  0x3b   : > { %867 = vmatpush1.bf16.msra.mxu0 %v1420_v17 }
  0x3c   : > { %868 = vmatprep.subr.bf16.mxu0 %v1425_v18 }
  0x3e   : > { %516 = vmatmul.mubr.bf16.gmra.mrb[8].mxu0 %v320_v39  ;;  %v1836_v39 = vld [vmem:[%s2039_s2] ss:$0 sm:$0xff] }
  0x3f   : > { %523 = vmatprep.mubr.bf16.mxu0 %v323_v40  ;;  %869 = vmatpush1.bf16.msra.mxu0 %v1423_v23 }
  0x40   : > { %870 = vmatprep.subr.bf16.mxu0 %v1428_v24 }
  0x43   : > { %871 = vmatpush1.bf16.msra.mxu0 %v1426_v25 }
  0x46   : > { %524 = vmatmul.mubr.bf16.gmra.mrb[12].mxu0 %v322_v45 }
  0x47   : > { %531 = vmatprep.mubr.bf16.mxu0 %v325_v46 }
  0x4e   : > { %532 = vmatmul.mubr.bf16.gmra.mrb[16].mxu0 %v324_v51 }
  0x4f   : > { %539 = vmatprep.mubr.bf16.mxu0 %v327_v52 }
  0x56   : > { %540 = vmatmul.mubr.bf16.gmra.mrb[20].mxu0 %v326_v57 }
  0x57   : > { %547 = vmatprep.mubr.bf16.mxu0 %v329_v58 }
  0x5e   : > { %548 = vmatmul.mubr.bf16.gmra.mrb[24].mxu0 %v328_v63 }
  0x5f   : > { %555 = vmatprep.mubr.bf16.mxu0 %v331_v0 }
  0x66   : > { %556 = vmatmul.mubr.bf16.gmra.mrb[28].mxu0 %v330_v3 }
 0x101   : > { %v1233_v26 = vpop.f32.mrb[0].mxu0 }
 0x102   : > { %v1234_v27 = vpop.f32.mrb[1].mxu0 }
 0x103   : > { %v1235_v30 = vadd.f32 %v1234_v27, %v1233_v26  ;;  %v1236_v33 = vpop.f32.mrb[2].mxu0 }
 0x104   : > { %v1237_v34 = vpop.f32.mrb[3].mxu0 }
 0x105   : > { %v1238_v40 = vadd.f32 %v1237_v34, %v1236_v33  ;;  %v502_v45 = vadd.f32 %v1235_v30, %v1836_v39 }
 0x107   : > { %v505_v46 = vadd.f32 %v1238_v40, %v1836_v39 }
 0x109   : > { %v1239_v51 = vpop.f32.mrb[4].mxu0  ;;  %v564_v52 = vpack.c.bf16 %v505_v46, %v502_v45 }
 0x10a   : > { %v1240_v57 = vpop.f32.mrb[5].mxu0 }
 0x10b   : > { %v1241_v58 = vadd.f32 %v1240_v57, %v1239_v51  ;;  %v1242_v63 = vpop.f32.mrb[6].mxu0  ;;  %1313 = vmatprep.mubr.bf16.mxu1 %v564_v52 }
 0x10c   : > { %v1243_v0 = vpop.f32.mrb[7].mxu0 }
 0x10d   : > { %v1244_v3 = vadd.f32 %v1243_v0, %v1242_v63  ;;  %v510_v4 = vadd.f32 %v1241_v58, %v1836_v39 }
 0x10f   : > { %v513_v5 = vadd.f32 %v1244_v3, %v1836_v39 }
 0x111   : > { %v1245_v6 = vpop.f32.mrb[8].mxu0  ;;  %v565_v7 = vpack.c.bf16 %v513_v5, %v510_v4 }
 0x112   : > { %v1246_v9 = vpop.f32.mrb[9].mxu0 }
 0x113   : > { %v1247_v26 = vadd.f32 %v1246_v9, %v1245_v6  ;;  %v1248_v27 = vpop.f32.mrb[10].mxu0  ;;  %1314 = vmatmul.mubr.bf16.vlgmr.msra.gmra.mrb[0].mxu1 %v565_v7 }
 0x114   : > { %v1249_v30 = vpop.f32.mrb[11].mxu0  ;;  %1337 = vmatpush1.bf16.msra.mxu1 %v1411_v8 }
 0x115   : > { %v1250_v33 = vadd.f32 %v1249_v30, %v1248_v27  ;;  %1330 = vmatprep.subr.bf16.mxu1 %v1416_v10  ;;  %v518_v34 = vadd.f32 %v1247_v26, %v1836_v39 }
 0x117   : > { %v521_v40 = vadd.f32 %v1250_v33, %v1836_v39 }
 0x118   : > { %1338 = vmatpush1.bf16.msra.mxu1 %v1414_v13 }
 0x119   : > { %v1251_v45 = vpop.f32.mrb[12].mxu0  ;;  %v566_v46 = vpack.c.bf16 %v521_v40, %v518_v34  ;;  %1331 = vmatprep.subr.bf16.mxu1 %v1419_v14 }
 0x11a   : > { %v1252_v51 = vpop.f32.mrb[13].mxu0 }
 0x11b   : > { %v1253_v52 = vadd.f32 %v1252_v51, %v1251_v45  ;;  %v1254_v57 = vpop.f32.mrb[14].mxu0  ;;  %1317 = vmatprep.mubr.bf16.mxu1 %v566_v46 }
 0x11c   : > { %v1255_v58 = vpop.f32.mrb[15].mxu0  ;;  %1339 = vmatpush1.bf16.msra.mxu1 %v1417_v15 }
 0x11d   : > { %v1256_v63 = vadd.f32 %v1255_v58, %v1254_v57  ;;  %1332 = vmatprep.subr.bf16.mxu1 %v1422_v16  ;;  %v526_v8 = vadd.f32 %v1253_v52, %v1836_v39 }
 0x11f   : > { %v529_v10 = vadd.f32 %v1256_v63, %v1836_v39 }
 0x120   : > { %1340 = vmatpush1.bf16.msra.mxu1 %v1420_v17 }
 0x121   : > { %v1257_v0 = vpop.f32.mrb[16].mxu0  ;;  %v567_v3 = vpack.c.bf16 %v529_v10, %v526_v8  ;;  %1333 = vmatprep.subr.bf16.mxu1 %v1425_v18 }
 0x122   : > { %v1258_v13 = vpop.f32.mrb[17].mxu0 }
 0x123   : > { %v1259_v4 = vadd.f32 %v1258_v13, %v1257_v0  ;;  %v1260_v5 = vpop.f32.mrb[18].mxu0  ;;  %1318 = vmatmul.mubr.bf16.gmra.mrb[4].mxu1 %v567_v3 }
 0x124   : > { %v1261_v14 = vpop.f32.mrb[19].mxu0  ;;  %1341 = vmatpush1.bf16.msra.mxu1 %v1423_v23 }
 0x125   : > { %v1262_v6 = vadd.f32 %v1261_v14, %v1260_v5  ;;  %1334 = vmatprep.subr.bf16.mxu1 %v1428_v24  ;;  %v534_v15 = vadd.f32 %v1259_v4, %v1836_v39 }
 0x127   : > { %v537_v16 = vadd.f32 %v1262_v6, %v1836_v39  ;;  %v1431_v6 = vld [vmem:[%s2042_s5 + $0x64] ss:$8 sps:$4 sm:$0xff]  }
 0x128   : > { %1342 = vmatpush1.bf16.msra.mxu1 %v1426_v25  ;;  %872 = vmatprep.subr.bf16.mxu0 %v1431_v6 }
 0x129   : > { %v1263_v7 = vpop.f32.mrb[20].mxu0  ;;  %v568_v9 = vpack.c.bf16 %v537_v16, %v534_v15  ;;  %v1429_v15 = vld [vmem:[%s2042_s5 + $0x60] ss:$8 sps:$4 sm:$0xff]   ;;  %1335 = vmatprep.subr.bf16.mxu1 %v1431_v6  ;;  %v1434_v16 = vld [vmem:[%s2042_s5 + $0x74] ss:$8 sps:$4 sm:$0xff]  }
 0x12a   : > { %v1264_v26 = vpop.f32.mrb[21].mxu0  ;;  %873 = vmatpush1.bf16.msra.mxu0 %v1429_v15 }
 0x12b   : > { %v1265_v17 = vadd.f32 %v1264_v26, %v1263_v7  ;;  %v1266_v27 = vpop.f32.mrb[22].mxu0  ;;  %1321 = vmatprep.mubr.bf16.mxu1 %v568_v9  ;;  %874 = vmatprep.subr.bf16.mxu0 %v1434_v16  ;;  %v1499_v7 = vmov 0   ;;  %v1183_v9 = vld [vmem:[%s2041_s4] ss:$0 sm:$0xff] }
 0x12c   : > { %v1267_v18 = vpop.f32.mrb[23].mxu0  ;;  %1343 = vmatpush1.bf16.msra.mxu1 %v1429_v15  ;;  %892 = vmatprep.mubr.bf16.mxu0 %v1499_v7 }
 0x12d   : > { %v1268_v30 = vadd.f32 %v1267_v18, %v1266_v27  ;;  %v542_v33 = vadd.f32 %v1265_v17, %v1836_v39  ;;  %1336 = vmatprep.subr.bf16.mxu1 %v1434_v16 }
 0x12f   : > { %v545_v34 = vadd.f32 %v1268_v30, %v1836_v39 }
 0x131   : > { %v1269_v23 = vpop.f32.mrb[24].mxu0  ;;  %v569_v40 = vpack.c.bf16 %v545_v34, %v542_v33 }
 0x132   : > { %v1270_v24 = vpop.f32.mrb[25].mxu0 }
 0x133   : > { %v1271_v45 = vadd.f32 %v1270_v24, %v1269_v23  ;;  %v1272_v46 = vpop.f32.mrb[26].mxu0  ;;  %1322 = vmatmul.mubr.bf16.gmra.mrb[8].mxu1 %v569_v40 }
 0x134   : > { %v1273_v51 = vpop.f32.mrb[27].mxu0 }
 0x135   : > { %v1274_v25 = vadd.f32 %v1273_v51, %v1272_v46  ;;  %v550_v52 = vadd.f32 %v1271_v45, %v1836_v39 }
 0x137   : > { %v553_v57 = vadd.f32 %v1274_v25, %v1836_v39 }
 0x139   : > { %v1275_v58 = vpop.f32.mrb[28].mxu0  ;;  %v570_v63 = vpack.c.bf16 %v553_v57, %v550_v52 }
 0x13a   : > { %v1276_v8 = vpop.f32.mrb[29].mxu0 }
 0x13b   : > { %v1277_v10 = vadd.f32 %v1276_v8, %v1275_v58  ;;  %v1278_v0 = vpop.f32.mrb[30].mxu0  ;;  %1325 = vmatprep.mubr.bf16.mxu1 %v570_v63 }
 0x13c   : > { %v1279_v3 = vpop.f32.mrb[31].mxu0 }
 0x13d   : > { %v1280_v13 = vadd.f32 %v1279_v3, %v1278_v0  ;;  %v558_v4 = vadd.f32 %v1277_v10, %v1836_v39 }
 0x13f   : > { %v561_v5 = vadd.f32 %v1280_v13, %v1836_v39  ;;  %v1432_v39 = vld [vmem:[%s2042_s5 + $0x70] ss:$8 sps:$4 sm:$0xff]  }
 0x140   : > { %875 = vmatpush1.bf16.msra.mxu0 %v1432_v39  ;;  %1344 = vmatpush1.bf16.msra.mxu1 %v1432_v39 }
 0x141   : > { %v571_v14 = vpack.c.bf16 %v561_v5, %v558_v4 }
 0x143   : > { %1326 = vmatmul.mubr.bf16.gmra.mrb[12].mxu1 %v571_v14 }
 0x144   : > { %912 = vmatprep.mubr.bf16.mxu1 %v1499_v7 }
 0x1e6   : > { %v1315_v26 = vpop.f32.mrb[0].mxu1 }
 0x1e7   : > { %v686_v17 = vadd.f32 %v1315_v26, %v1183_v9  ;;  %v677_v27 = vpop.f32.mrb[1].mxu1 }
 0x1e8   : > { %v678_v18 = vadd.f32 %v1183_v9, %v677_v27  ;;  %v1316_v30 = vpop.f32.mrb[2].mxu1 }
 0x1e9   : > { %v689_v33 = vadd.f32 %v1316_v30, %v1183_v9  ;;  %v680_v34 = vpop.f32.mrb[3].mxu1  ;;  %v742_v40 = vmax.f32 %v686_v17, 0.0 }
 0x1ea   : > { %v681_v23 = vadd.f32 %v1183_v9, %v680_v34  ;;  %v740_v45 = vmax.f32 %v678_v18, 0.0 }
 0x1eb   : > { %v743_v24 = vmax.f32 %v689_v33, 0.0 }
 0x1ec   : > { %v741_v46 = vmax.f32 %v681_v23, 0.0 }
 0x1ed   : > { %v757_v51 = vpack.c.bf16 %v743_v24, %v742_v40 }
 0x1ee   : > { %v756_v25 = vpack.c.bf16 %v741_v46, %v740_v45 }
 0x1f0   : > { %893 = vmatmul.mubr.bf16.vlgmr.msra.gmra.mrb[32].mxu0 %v756_v25 }
 0x1f1   : > { %902 = vmatprep.mubr.bf16.mxu0 %v1499_v7 }
 0x1f6   : > { %v1319_v52 = vpop.f32.mrb[4].mxu1 }
 0x1f7   : > { %v702_v57 = vadd.f32 %v1319_v52, %v1183_v9  ;;  %v693_v58 = vpop.f32.mrb[5].mxu1 }
 0x1f8   : > { %v694_v63 = vadd.f32 %v1183_v9, %v693_v58  ;;  %v1320_v8 = vpop.f32.mrb[6].mxu1  ;;  %903 = vmatmul.mubr.bf16.gmra.mrb[36].mxu0 %v757_v51 }
 0x1f9   : > { %v705_v10 = vadd.f32 %v1320_v8, %v1183_v9  ;;  %v696_v0 = vpop.f32.mrb[7].mxu1  ;;  %v746_v13 = vmax.f32 %v702_v57, 0.0 }
 0x1fa   : > { %v697_v3 = vadd.f32 %v1183_v9, %v696_v0  ;;  %v744_v5 = vmax.f32 %v694_v63, 0.0 }
 0x1fb   : > { %v747_v4 = vmax.f32 %v705_v10, 0.0 }
 0x1fc   : > { %v745_v14 = vmax.f32 %v697_v3, 0.0 }
 0x1fd   : > { %v759_v6 = vpack.c.bf16 %v747_v4, %v746_v13 }
 0x1fe   : > { %v758_v15 = vpack.c.bf16 %v745_v14, %v744_v5 }
 0x200   : > { %913 = vmatmul.mubr.bf16.vlgmr.msra.gmra.mrb[16].mxu1 %v758_v15 }
 0x201   : > { %922 = vmatprep.mubr.bf16.mxu1 %v1499_v7 }
 0x206   : > { %v1323_v16 = vpop.f32.mrb[8].mxu1 }
 0x207   : > { %v718_v39 = vadd.f32 %v1323_v16, %v1183_v9  ;;  %v709_v26 = vpop.f32.mrb[9].mxu1 }
 0x208   : > { %v710_v17 = vadd.f32 %v1183_v9, %v709_v26  ;;  %v1324_v27 = vpop.f32.mrb[10].mxu1  ;;  %923 = vmatmul.mubr.bf16.gmra.mrb[20].mxu1 %v759_v6  ;;  %v1007_v6 = vlaneseq }
 0x209   : > { %v721_v18 = vadd.f32 %v1324_v27, %v1183_v9  ;;  %v712_v30 = vpop.f32.mrb[11].mxu1  ;;  %932 = vmatprep.mubr.bf16.mxu1 %v1499_v7  ;;  %v750_v34 = vmax.f32 %v718_v39, 0.0  ;;  %v1005_v39 = vld [vmem:[%s2043_s6] sm:$0x3] }
 0x20a   : > { %v713_v33 = vadd.f32 %v1183_v9, %v712_v30  ;;  %v748_v40 = vmax.f32 %v710_v17, 0.0  ;;  %v1008_v15 = vshrl.u32 %v1007_v6, 7 }
 0x20b   : > { %v751_v23 = vmax.f32 %v721_v18, 0.0 }
 0x20c   : > { %v749_v24 = vmax.f32 %v713_v33, 0.0  ;;  %v1009_v16 = vsub.s32 0, %v1008_v15 }
 0x20d   : > { %v761_v45 = vpack.c.bf16 %v751_v23, %v750_v34 }
 0x20e   : > { %v760_v46 = vpack.c.bf16 %v749_v24, %v748_v40  ;;  %v1883_v26 = vrot.slane %v1005_v39, %v1009_v16 }
 0x210   : > { %933 = vmatmul.mubr.bf16.gmra.mrb[24].mxu1 %v760_v46 }
 0x211   : > { %942 = vmatprep.mubr.bf16.mxu1 %v1499_v7 }
 0x216   : > { %v1327_v51 = vpop.f32.mrb[12].mxu1 }
 0x217   : > { %v734_v25 = vadd.f32 %v1327_v51, %v1183_v9  ;;  %v725_v52 = vpop.f32.mrb[13].mxu1 }
 0x218   : > { %v726_v57 = vadd.f32 %v1183_v9, %v725_v52  ;;  %v1328_v58 = vpop.f32.mrb[14].mxu1  ;;  %943 = vmatmul.mubr.bf16.gmra.mrb[28].mxu1 %v761_v45 }
 0x219   : > { %v737_v63 = vadd.f32 %v1328_v58, %v1183_v9  ;;  %v728_v8 = vpop.f32.mrb[15].mxu1  ;;  %952 = vmatprep.mubr.bf16.mxu1 %v1499_v7  ;;  %v754_v0 = vmax.f32 %v734_v25, 0.0 }
 0x21a   : > { %v729_v10 = vadd.f32 %v1183_v9, %v728_v8  ;;  %v752_v13 = vmax.f32 %v726_v57, 0.0  ;;  %v1013_v9 = vsub.s32 1, %v1008_v15 }
 0x21b   : > { %v755_v3 = vmax.f32 %v737_v63, 0.0 }
 0x21c   : > { %v753_v4 = vmax.f32 %v729_v10, 0.0  ;;  %v1885_v27 = vrot.slane %v1005_v39, %v1013_v9 }
 0x21d   : > { %v763_v5 = vpack.c.bf16 %v755_v3, %v754_v0 }
 0x21e   : > { %v762_v14 = vpack.c.bf16 %v753_v4, %v752_v13 }
 0x220   : > { %953 = vmatmul.mubr.bf16.gmra.mrb[32].mxu1 %v762_v14 }
 0x221   : > { %962 = vmatprep.mubr.bf16.mxu1 %v1499_v7 }
 0x228   : > { %963 = vmatmul.mubr.bf16.gmra.mrb[36].mxu1 %v763_v5 }
 0x2c3   : > { %v894_v17 = vpop.f32.mrb[32].mxu0 }
 0x2c4   : > { %v973_v18 = vadd.f32 %v894_v17, %v1654_v19  ;;  %v896_v7 = vpop.f32.mrb[33].mxu0 }
 0x2c5   : > { %v974_v30 = vadd.f32 %v896_v7, %v1631_v11  ;;  %v898_v33 = vpop.f32.mrb[34].mxu0 }
 0x2c6   : > { %v1017_v34 = vadd.f32 %v1883_v26, %v973_v18  ;;  %v975_v23 = vadd.f32 %v898_v33, %v1657_v20  ;;  %v900_v40 = vpop.f32.mrb[35].mxu0 }
 0x2c7   : > { %v1018_v24 = vadd.f32 %v1885_v27, %v974_v30  ;;  %v976_v45 = vadd.f32 %v900_v40, %v1634_v12 }
 0x2c8   : > { %1049 = vst [vmem:[%s1893_s22] sm:$0xff] %v1017_v34  ;;  %v1019_v11 = vadd.f32 %v1883_v26, %v975_v23 }
 0x2c9   : > { %1050 = vst [vmem:[%s1893_s22 + $0x8] sm:$0xff] %v1018_v24  ;;  %v1020_v19 = vadd.f32 %v1885_v27, %v976_v45 }
 0x2ca   : > { %1051 = vst [vmem:[%s1893_s22 + $0x10] sm:$0xff] %v1019_v11 }
 0x2cb   : > { %1052 = vst [vmem:[%s1893_s22 + $0x18] sm:$0xff] %v1020_v19  ;;  %v904_v20 = vpop.f32.mrb[36].mxu0 }
 0x2cc   : > { %v977_v12 = vadd.f32 %v904_v20, %v1679_v28  ;;  %v906_v46 = vpop.f32.mrb[37].mxu0 }
 0x2cd   : > { %v978_v51 = vadd.f32 %v906_v46, %v1660_v21  ;;  %v908_v25 = vpop.f32.mrb[38].mxu0 }
 0x2ce   : > { %v1021_v52 = vadd.f32 %v1883_v26, %v977_v12  ;;  %v979_v57 = vadd.f32 %v908_v25, %v1682_v29  ;;  %v910_v58 = vpop.f32.mrb[39].mxu0 }
 0x2cf   : > { %v1022_v63 = vadd.f32 %v1885_v27, %v978_v51  ;;  %v980_v8 = vadd.f32 %v910_v58, %v1663_v22 }
 0x2d0   : > { %1053 = vst [vmem:[%s1893_s22 + $0x20] sm:$0xff] %v1021_v52  ;;  %v1023_v10 = vadd.f32 %v1883_v26, %v979_v57 }
 0x2d1   : > { %1054 = vst [vmem:[%s1893_s22 + $0x28] sm:$0xff] %v1022_v63  ;;  %v1024_v28 = vadd.f32 %v1885_v27, %v980_v8 }
 0x2d2   : > { %1055 = vst [vmem:[%s1893_s22 + $0x30] sm:$0xff] %v1023_v10 }
 0x2d3   : > { %1056 = vst [vmem:[%s1893_s22 + $0x38] sm:$0xff] %v1024_v28  ;;  %v914_v21 = vpop.f32.mrb[16].mxu1 }
 0x2d4   : > { %v981_v29 = vadd.f32 %v914_v21, %v1698_v35  ;;  %v916_v0 = vpop.f32.mrb[17].mxu1 }
 0x2d5   : > { %v982_v3 = vadd.f32 %v916_v0, %v1688_v31  ;;  %v918_v13 = vpop.f32.mrb[18].mxu1 }
 0x2d6   : > { %v1025_v22 = vadd.f32 %v1883_v26, %v981_v29  ;;  %v983_v4 = vadd.f32 %v918_v13, %v1701_v36  ;;  %v920_v5 = vpop.f32.mrb[19].mxu1 }
 0x2d7   : > { %v1026_v14 = vadd.f32 %v1885_v27, %v982_v3  ;;  %v984_v6 = vadd.f32 %v920_v5, %v1691_v32 }
 0x2d8   : > { %1057 = vst [vmem:[%s1893_s22 + $0x40] sm:$0xff] %v1025_v22  ;;  %v1027_v15 = vadd.f32 %v1883_v26, %v983_v4 }
 0x2d9   : > { %1058 = vst [vmem:[%s1893_s22 + $0x48] sm:$0xff] %v1026_v14  ;;  %v1028_v35 = vadd.f32 %v1885_v27, %v984_v6 }
 0x2da   : > { %1059 = vst [vmem:[%s1893_s22 + $0x50] sm:$0xff] %v1027_v15 }
 0x2db   : > { %1060 = vst [vmem:[%s1893_s22 + $0x58] sm:$0xff] %v1028_v35  ;;  %v924_v31 = vpop.f32.mrb[20].mxu1 }
 0x2dc   : > { %v985_v36 = vadd.f32 %v924_v31, %v1714_v41  ;;  %v926_v16 = vpop.f32.mrb[21].mxu1 }
 0x2dd   : > { %v986_v39 = vadd.f32 %v926_v16, %v1704_v37  ;;  %v928_v9 = vpop.f32.mrb[22].mxu1 }
 0x2de   : > { %v1029_v32 = vadd.f32 %v1883_v26, %v985_v36  ;;  %v987_v17 = vadd.f32 %v928_v9, %v1717_v42  ;;  %v930_v18 = vpop.f32.mrb[23].mxu1 }
 0x2df   : > { %v1030_v7 = vadd.f32 %v1885_v27, %v986_v39  ;;  %v988_v30 = vadd.f32 %v930_v18, %v1707_v38 }
 0x2e0   : > { %1061 = vst [vmem:[%s1893_s22 + $0x60] sm:$0xff] %v1029_v32  ;;  %v1031_v33 = vadd.f32 %v1883_v26, %v987_v17 }
 0x2e1   : > { %1062 = vst [vmem:[%s1893_s22 + $0x68] sm:$0xff] %v1030_v7  ;;  %v1032_v41 = vadd.f32 %v1885_v27, %v988_v30 }
 0x2e2   : > { %1063 = vst [vmem:[%s1893_s22 + $0x70] sm:$0xff] %v1031_v33 }
 0x2e3   : > { %1064 = vst [vmem:[%s1893_s22 + $0x78] sm:$0xff] %v1032_v41  ;;  %v934_v37 = vpop.f32.mrb[24].mxu1 }
 0x2e4   : > { %v989_v42 = vadd.f32 %v934_v37, %v1730_v47  ;;  %v936_v34 = vpop.f32.mrb[25].mxu1 }
 0x2e5   : > { %v990_v23 = vadd.f32 %v936_v34, %v1720_v43  ;;  %v938_v40 = vpop.f32.mrb[26].mxu1 }
 0x2e6   : > { %v1033_v38 = vadd.f32 %v1883_v26, %v989_v42  ;;  %v991_v24 = vadd.f32 %v938_v40, %v1733_v48  ;;  %v940_v45 = vpop.f32.mrb[27].mxu1 }
 0x2e7   : > { %v1034_v11 = vadd.f32 %v1885_v27, %v990_v23  ;;  %v992_v19 = vadd.f32 %v940_v45, %v1723_v44 }
 0x2e8   : > { %1065 = vst [vmem:[%s1893_s22 + $0x80] sm:$0xff] %v1033_v38  ;;  %v1035_v20 = vadd.f32 %v1883_v26, %v991_v24 }
 0x2e9   : > { %1066 = vst [vmem:[%s1893_s22 + $0x88] sm:$0xff] %v1034_v11  ;;  %v1036_v47 = vadd.f32 %v1885_v27, %v992_v19 }
 0x2ea   : > { %1067 = vst [vmem:[%s1893_s22 + $0x90] sm:$0xff] %v1035_v20 }
 0x2eb   : > { %1068 = vst [vmem:[%s1893_s22 + $0x98] sm:$0xff] %v1036_v47  ;;  %v944_v43 = vpop.f32.mrb[28].mxu1 }
 0x2ec   : > { %v993_v48 = vadd.f32 %v944_v43, %v1746_v53  ;;  %v946_v12 = vpop.f32.mrb[29].mxu1 }
 0x2ed   : > { %v994_v46 = vadd.f32 %v946_v12, %v1736_v49  ;;  %v948_v51 = vpop.f32.mrb[30].mxu1 }
 0x2ee   : > { %v1037_v44 = vadd.f32 %v1883_v26, %v993_v48  ;;  %v995_v25 = vadd.f32 %v948_v51, %v1749_v54  ;;  %v950_v52 = vpop.f32.mrb[31].mxu1 }
 0x2ef   : > { %v1038_v57 = vadd.f32 %v1885_v27, %v994_v46  ;;  %v996_v58 = vadd.f32 %v950_v52, %v1739_v50 }
 0x2f0   : > { %1069 = vst [vmem:[%s1893_s22 + $0xa0] sm:$0xff] %v1037_v44  ;;  %v1039_v63 = vadd.f32 %v1883_v26, %v995_v25 }
 0x2f1   : > { %1070 = vst [vmem:[%s1893_s22 + $0xa8] sm:$0xff] %v1038_v57  ;;  %v1040_v53 = vadd.f32 %v1885_v27, %v996_v58 }
 0x2f2   : > { %1071 = vst [vmem:[%s1893_s22 + $0xb0] sm:$0xff] %v1039_v63 }
 0x2f3   : > { %1072 = vst [vmem:[%s1893_s22 + $0xb8] sm:$0xff] %v1040_v53  ;;  %v954_v49 = vpop.f32.mrb[32].mxu1 }
 0x2f4   : > { %v997_v54 = vadd.f32 %v954_v49, %v1762_v59  ;;  %v956_v8 = vpop.f32.mrb[33].mxu1 }
 0x2f5   : > { %v998_v10 = vadd.f32 %v956_v8, %v1752_v55  ;;  %v958_v28 = vpop.f32.mrb[34].mxu1 }
 0x2f6   : > { %v1041_v50 = vadd.f32 %v1883_v26, %v997_v54  ;;  %v999_v21 = vadd.f32 %v958_v28, %v1765_v60  ;;  %v960_v29 = vpop.f32.mrb[35].mxu1 }
 0x2f7   : > { %v1042_v0 = vadd.f32 %v1885_v27, %v998_v10  ;;  %v1000_v3 = vadd.f32 %v960_v29, %v1755_v56 }
 0x2f8   : > { %1073 = vst [vmem:[%s1893_s22 + $0xc0] sm:$0xff] %v1041_v50  ;;  %v1043_v13 = vadd.f32 %v1883_v26, %v999_v21 }
 0x2f9   : > { %1074 = vst [vmem:[%s1893_s22 + $0xc8] sm:$0xff] %v1042_v0  ;;  %v1044_v59 = vadd.f32 %v1885_v27, %v1000_v3 }
 0x2fa   : > { %1075 = vst [vmem:[%s1893_s22 + $0xd0] sm:$0xff] %v1043_v13 }
 0x2fb   : > { %1076 = vst [vmem:[%s1893_s22 + $0xd8] sm:$0xff] %v1044_v59  ;;  %v964_v55 = vpop.f32.mrb[36].mxu1 }
 0x2fc   : > { %v1001_v22 = vadd.f32 %v964_v55, %v1778_v1  ;;  %v966_v60 = vpop.f32.mrb[37].mxu1 }
 0x2fd   : > { %v1002_v4 = vadd.f32 %v966_v60, %v1768_v61  ;;  %v968_v5 = vpop.f32.mrb[38].mxu1 }
 0x2fe   : > { %v1045_v56 = vadd.f32 %v1883_v26, %v1001_v22  ;;  %v1003_v14 = vadd.f32 %v968_v5, %v1781_v2  ;;  %v970_v6 = vpop.f32.mrb[39].mxu1 }
 0x2ff   : > { %v1046_v15 = vadd.f32 %v1885_v27, %v1002_v4  ;;  %v1004_v35 = vadd.f32 %v970_v6, %v1771_v62 }
 0x300   : > { %1077 = vst [vmem:[%s1893_s22 + $0xe0] sm:$0xff] %v1045_v56  ;;  %v1047_v1 = vadd.f32 %v1883_v26, %v1003_v14 }
 0x301   : > { %1078 = vst [vmem:[%s1893_s22 + $0xe8] sm:$0xff] %v1046_v15  ;;  %v1048_v61 = vadd.f32 %v1885_v27, %v1004_v35 }
 0x302   : > { %1079 = vst [vmem:[%s1893_s22 + $0xf0] sm:$0xff] %v1047_v1 }
 0x303   : > { %1080 = vst [vmem:[%s1893_s22 + $0xf8] sm:$0xff] %v1048_v61 }
 0x304   : > { %1448 = shalt.err (!%p1445_p3)
}
 0x305   : > { %s1449_s20 = scalar_lea.hbm %s1986_s14, 4096  ;;  %s1453_s15 = scalar_lea.hbm %s2044_s7, 8192 }
 0x306   : > { %p1450_p4 = scmp.ne.s32.totalorder %s1986_s14, %s1449_s20  ;;  %p1454_p9 = scmp.lt.u32.totalorder %s1986_s14, %s2044_s7 }
 0x307   : > { %p1455_p10 = scmp.lt.u32.totalorder %s1453_s15, %s1449_s20  ;;  %p1457_p12 = scmp.lt.u32.totalorder %s1449_s20, %s1986_s14 }
 0x308   : > { %p1451_p7 = pnand %p1450_p4, %p1581_p5 }
 0x309   : > { %p1456_p11 = por %p1455_p10, %p1454_p9 }
 0x30a   : > { %p1452_p8 = pneg %p1451_p7 }
 0x30b   : > { %p1458_p13 = por %p1457_p12, %p1456_p11 }
 0x30d   : > { %p1459_p0 = pnand %p1458_p13, %p1452_p8 }
 0x30f   : > { %1462 = shalt.err (!%p1459_p0)
}
 0x310   : > { %s1501_s9 = smov 256   ;;  %s1502_s13 = smov 16  }
 0x311   : > { %1345 = dma.vmem_to_hbm [thread:$0]  (%p1581_p5), %s1988_s8, 4096, %s1986_s14, %s1996_s28, %s1501_s9, %s1501_s9, %s1502_s13  }
 0x312 PF: > { %p1351_p1 = scmp.ge.s32.totalorder %s1497_s27, 2  ;;  %s1111_s16 = sand.u32 1, %s1485_s24  }
 0x313   : > { %s1112_s17 = scalar_lea.sflag [#allocation3], %s1111_s16 }
 0x314   : > { %p1348_p2 = pnand %p1351_p1, %p1585_p6 }
 0x316   : > { %1480 = dma.done.wait (!%p1348_p2), %s1112_s17, 4096  }
 0x317   : > { %1482 = vsyncadd (!%p1348_p2), %s1112_s17, 4294963200  ;;  %p17_p3 = scmp.ge.s32.totalorder %s1568_s30, 4   ;;  %s2047_s24 = smov %s1489_s25 }
 0x318   : > { %s2048_s25 = smov %s1493_s26  ;;  %s2049_s26 = smov %s1579_s10 }
 0x319   : > { %s2050_s27 = smov %s1568_s30  ;;  %19 = sbr.rel (!%p17_p3) target bundleno = 3 (0x3), region = 83 }
 0x320   :  { %1117 = vsyncpa [#allocation3], 1 }
 0x321   :  { %1119 = vsyncpa [#allocation3 + $0x1], 1 }

// kernel: _fcn_call.1
= control target key start
LH: loop header
LB: loop body
LE: loop exit
PB: predicated region body
PF: predicated region fallthrough
CT: control target
= control target key end

     0   :  { %12 = vsyncpa [#allocation3], 0  ;;  %s2037_s0 = inlined_call_operand.vmem [shape: f32[256,256], index: 0, kind: input, shape index: {}]   ;;  %s2038_s1 = inlined_call_operand.vmem [shape: bf16[256,128], index: 1, kind: input, shape index: {}]   ;;  %s2039_s2 = inlined_call_operand.vmem [shape: f32[1,128], index: 2, kind: input, shape index: {}]   ;;  %s2040_s3 = inlined_call_operand.vmem [shape: bf16[128,128], index: 3, kind: input, shape index: {}]   ;;  %s2041_s4 = inlined_call_operand.vmem [shape: f32[1,128], index: 4, kind: input, shape index: {}]   ;;  %s2042_s5 = inlined_call_operand.vmem [shape: bf16[128,256], index: 5, kind: input, shape index: {}]   ;;  %s2043_s6 = inlined_call_operand.vmem [shape: f32[1,256], index: 6, kind: input, shape index: {}]   ;;  %s2044_s7 = inlined_call_operand.hbm [shape: f32[256,256], index: 7, kind: output, shape index: {}]  }
   0x1   :  { %14 = vsyncpa [#allocation3 + $0x1], 0  ;;  %s1543_s24 = smov 0   ;;  %s1545_s25 = smov 0  }
   0x2   :  { %s1547_s26 = smov 0   ;;  %s1549_s27 = smov 0  }
   0x3 LB: > { %s1564_s28 = sadd.s32 4294967295, %s1497_s27   ;;  %s1158_s29 = sadd.s32 4294967294, %s1497_s27   ;;  %s1497_s27 = sphi %s1549_s27, %s2050_s27   ;;  %s1493_s26 = sphi %s1547_s26, %s2049_s26   ;;  %s1489_s25 = sphi %s1545_s25, %s2048_s25   ;;  %s1485_s24 = sphi %s1543_s24, %s2047_s24  }
   0x4   : > { %s1568_s30 = sadd.s32 1, %s1497_s27   ;;  %s179_s8 = sadd.s32 1, %s1493_s26 }
   0x5   : > { %s176_s9 = ssub.s32 %s1497_s27, %s1568_s30  ;;  %p189_p0 = scmp.ne.s32.totalorder %s1493_s26, %s1489_s25 }
   0x6   : > { %p177_p1 = scmp.eq.s32.totalorder %s176_s9, 0  ;;  %p190_p2 = scmp.eq.s32.totalorder %s1564_s28, 1 }
   0x7   : > { %p195_p3 = scmp.ne.s32.totalorder %s1489_s25, %s1485_s24  ;;  %p196_p4 = scmp.eq.s32.totalorder %s1158_s29, 1 }
   0x8   : > { %s1579_s10 = scalar_select %p177_p1, %s1493_s26, %s179_s8  }
   0x9   : > { %p1581_p5 = por %p190_p2, %p189_p0  ;;  %p1585_p6 = por %p196_p4, %p195_p3 }
   0xa   : > { %p1161_p7 = scmp.ge.s32.totalorder %s1497_s27, 1  ;;  %p242_p8 = scmp.lt.s32.totalorder %s1497_s27, 3 }
   0xc   : > { %p243_p9 = pnand %p1161_p7, %p242_p8 }
   0xd   : > { %v1387_v0 = vld [vmem:[%s2038_s1 + $0x40] sm:$0xff] (!%p243_p9)   ;;  %s1163_s15 = sshll.u32 (!%p243_p9), %s1564_s28, 4  ;;  %v1389_v2 = vld [vmem:[%s2038_s1 + $0x48] sm:$0xff] (!%p243_p9)   ;;  %v1391_v4 = vld [vmem:[%s2038_s1 + $0x50] sm:$0xff] (!%p243_p9)   ;;  %s272_s20 = sand.u32 (!%p243_p9), 1, %s1489_s25  }
   0xe   : > { %246 = sbr.rel (%p243_p9) target bundleno = 786 (0x312), region = 48  ;;  %v1388_v1 = vld [vmem:[%s2038_s1] sm:$0xff] (!%p243_p9)   ;;  %1217 = vmatprep.subr.bf16.mxu0 (!%p243_p9), %v1387_v0  ;;  %p276_p10 = scmp.lt.s32.totalorder (!%p243_p9), %s1163_s15, 31  ;;  %v1390_v3 = vld [vmem:[%s2038_s1 + $0x8] sm:$0xff] (!%p243_p9)   ;;  %v1392_v5 = vld [vmem:[%s2038_s1 + $0x10] sm:$0xff] (!%p243_p9)  }
   0xf   : > { %1218 = vmatpush3.bf16.msra.mxu0 (!%p243_p9), %v1388_v1  ;;  %v1393_v6 = vld [vmem:[%s2038_s1 + $0x58] sm:$0xff] (!%p243_p9)   ;;  %v1395_v8 = vld [vmem:[%s2038_s1 + $0x60] sm:$0xff] (!%p243_p9)   ;;  %v1397_v10 = vld [vmem:[%s2038_s1 + $0x68] sm:$0xff] (!%p243_p9)   ;;  %s1216_s29 = sshll.u32 (!%p243_p9), %s1564_s28, 12  ;;  %s1996_s28 = scalar_lea.sflag (!%p243_p9), [#allocation3], %s272_s20 }
  0x10   : > { %1219 = vmatprep.subr.bf16.mxu0 (!%p243_p9), %v1389_v2  ;;  %v1394_v7 = vld [vmem:[%s2038_s1 + $0x18] sm:$0xff] (!%p243_p9)   ;;  %v1396_v9 = vld [vmem:[%s2038_s1 + $0x20] sm:$0xff] (!%p243_p9)   ;;  %v1398_v14 = vld [vmem:[%s2038_s1 + $0x28] sm:$0xff] (!%p243_p9)   ;;  %s1500_s17 = smov (!%p243_p9), [#allocation2]  }
  0x11   : > { %v1399_v15 = vld [vmem:[%s2038_s1 + $0x70] sm:$0xff] (!%p243_p9)   ;;  %v1401_v17 = vld [vmem:[%s2038_s1 + $0x78] sm:$0xff] (!%p243_p9)   ;;  %v1403_v23 = vld [vmem:[%s2040_s3] sm:$0xff] (!%p243_p9)   ;;  %s1439_s18 = sshll.u32 (!%p243_p9), %s1500_s17, 4  ;;  %s1440_s18 = int_to_ptr.vmem [resolvable:$false] %s1439_s18 }
  0x12   : > { %v1400_v16 = vld [vmem:[%s2038_s1 + $0x30] sm:$0xff] (!%p243_p9)   ;;  %v1402_v18 = vld [vmem:[%s2038_s1 + $0x38] sm:$0xff] (!%p243_p9)   ;;  %v1404_v24 = vld [vmem:[%s2040_s3 + $0x8] sm:$0xff] (!%p243_p9)   ;;  %1297 = vmatprep.subr.bf16.mxu1 (!%p243_p9), %v1403_v23  ;;  %s1441_s19 = scalar_lea.vmem (!%p243_p9), %s1440_s18, 8192 }
  0x13   : > { %1220 = vmatpush3.bf16.msra.mxu0 (!%p243_p9), %v1390_v3  ;;  %1298 = vmatpush3.bf16.msra.mxu1 (!%p243_p9), %v1403_v23  ;;  %v1405_v26 = vld [vmem:[%s2040_s3 + $0x10] sm:$0xff] (!%p243_p9)   ;;  %v1406_v30 = vld [vmem:[%s2040_s3 + $0x18] sm:$0xff] (!%p243_p9)   ;;  %v1423_v23 = vld [vmem:[%s2042_s5 + $0x40] ss:$8 sps:$4 sm:$0xff] (!%p243_p9)  }
  0x14   : > { %1221 = vmatprep.subr.bf16.mxu0 (!%p243_p9), %v1391_v4  ;;  %1299 = vmatprep.subr.bf16.mxu1 (!%p243_p9), %v1404_v24  ;;  %v1407_v4 = vld [vmem:[%s2040_s3 + $0x20] sm:$0xff] (!%p243_p9)  }
  0x15   : > { %s2052_s15 = smov (!%p276_p10, %s1163_s15), 31 }
  0x16   : > { %s1214_s14 = sshll.u32 %s2052_s15, 4  ;;  %s1162_s15 = sshll.u32 %s272_s20, 8 }
  0x17   : > { %1222 = vmatpush3.bf16.msra.mxu0 %v1392_v5  ;;  %s1622_s22 = scalar_lea.vmem %s2037_s0, %s1214_s14  ;;  %1300 = vmatpush3.bf16.msra.mxu1 %v1404_v24  ;;  %v1408_v5 = vld [vmem:[%s2040_s3 + $0x28] sm:$0xff]   ;;  %v1428_v24 = vld [vmem:[%s2042_s5 + $0x54] ss:$8 sps:$4 sm:$0xff]   ;;  %s1986_s14 = scalar_lea.hbm %s2044_s7, %s1216_s29 }
  0x18   : > { %1223 = vmatprep.subr.bf16.mxu0 %v1393_v6  ;;  %v1631_v11 = vld [vmem:[%s1622_s22 + $0x8] sm:$0xff]  ;;  %v1634_v12 = vld [vmem:[%s1622_s22 + $0x18] sm:$0xff]  ;;  %v1654_v19 = vld [vmem:[%s1622_s22] sm:$0xff]  ;;  %1301 = vmatprep.subr.bf16.mxu1 %v1405_v26 }
  0x19   : > { %v317_v13 = vpack.c.bf16 %v1634_v12, %v1631_v11  ;;  %v1657_v20 = vld [vmem:[%s1622_s22 + $0x10] sm:$0xff]  ;;  %v1660_v21 = vld [vmem:[%s1622_s22 + $0x28] sm:$0xff]  ;;  %v1663_v22 = vld [vmem:[%s1622_s22 + $0x38] sm:$0xff] }
  0x1a   : > { %v316_v25 = vpack.c.bf16 %v1657_v20, %v1654_v19  ;;  %v319_v27 = vpack.c.bf16 %v1663_v22, %v1660_v21  ;;  %v1679_v28 = vld [vmem:[%s1622_s22 + $0x20] sm:$0xff]  ;;  %v1682_v29 = vld [vmem:[%s1622_s22 + $0x30] sm:$0xff]  ;;  %v1688_v31 = vld [vmem:[%s1622_s22 + $0x48] sm:$0xff] }
  0x1b   : > { %1224 = vmatpush3.bf16.msra.mxu0 %v1394_v7  ;;  %499 = vmatprep.mubr.bf16.mxu0 %v317_v13  ;;  %v1691_v32 = vld [vmem:[%s1622_s22 + $0x58] sm:$0xff]  ;;  %v318_v33 = vpack.c.bf16 %v1682_v29, %v1679_v28  ;;  %v1698_v35 = vld [vmem:[%s1622_s22 + $0x40] sm:$0xff]  ;;  %v1701_v36 = vld [vmem:[%s1622_s22 + $0x50] sm:$0xff] }
  0x1c   : > { %1225 = vmatprep.subr.bf16.mxu0 %v1395_v8  ;;  %1302 = vmatpush3.bf16.msra.mxu1 %v1405_v26  ;;  %v321_v34 = vpack.c.bf16 %v1691_v32, %v1688_v31  ;;  %v1704_v37 = vld [vmem:[%s1622_s22 + $0x68] sm:$0xff]  ;;  %v1707_v38 = vld [vmem:[%s1622_s22 + $0x78] sm:$0xff]  ;;  %v320_v39 = vpack.c.bf16 %v1701_v36, %v1698_v35  ;;  %v1714_v41 = vld [vmem:[%s1622_s22 + $0x60] sm:$0xff] }
  0x1d   : > { %1303 = vmatprep.subr.bf16.mxu1 %v1406_v30  ;;  %v323_v40 = vpack.c.bf16 %v1707_v38, %v1704_v37  ;;  %v1717_v42 = vld [vmem:[%s1622_s22 + $0x70] sm:$0xff]  ;;  %v1720_v43 = vld [vmem:[%s1622_s22 + $0x88] sm:$0xff]  ;;  %v1723_v44 = vld [vmem:[%s1622_s22 + $0x98] sm:$0xff] }
  0x1e   : > { %v322_v45 = vpack.c.bf16 %v1717_v42, %v1714_v41  ;;  %v325_v46 = vpack.c.bf16 %v1723_v44, %v1720_v43  ;;  %v1730_v47 = vld [vmem:[%s1622_s22 + $0x80] sm:$0xff]  ;;  %v1733_v48 = vld [vmem:[%s1622_s22 + $0x90] sm:$0xff]  ;;  %v1736_v49 = vld [vmem:[%s1622_s22 + $0xa8] sm:$0xff] }
  0x1f   : > { %1226 = vmatpush3.bf16.msra.mxu0 %v1396_v9  ;;  %v1739_v50 = vld [vmem:[%s1622_s22 + $0xb8] sm:$0xff]  ;;  %v324_v51 = vpack.c.bf16 %v1733_v48, %v1730_v47  ;;  %v1746_v53 = vld [vmem:[%s1622_s22 + $0xa0] sm:$0xff]  ;;  %v1749_v54 = vld [vmem:[%s1622_s22 + $0xb0] sm:$0xff] }
  0x20   : > { %1227 = vmatprep.subr.bf16.mxu0 %v1397_v10  ;;  %1304 = vmatpush3.bf16.msra.mxu1 %v1406_v30  ;;  %v327_v52 = vpack.c.bf16 %v1739_v50, %v1736_v49  ;;  %v1752_v55 = vld [vmem:[%s1622_s22 + $0xc8] sm:$0xff]  ;;  %v1755_v56 = vld [vmem:[%s1622_s22 + $0xd8] sm:$0xff]  ;;  %v326_v57 = vpack.c.bf16 %v1749_v54, %v1746_v53  ;;  %v1762_v59 = vld [vmem:[%s1622_s22 + $0xc0] sm:$0xff] }
  0x21   : > { %v329_v58 = vpack.c.bf16 %v1755_v56, %v1752_v55  ;;  %v1765_v60 = vld [vmem:[%s1622_s22 + $0xd0] sm:$0xff]  ;;  %v1768_v61 = vld [vmem:[%s1622_s22 + $0xe8] sm:$0xff]  ;;  %v1771_v62 = vld [vmem:[%s1622_s22 + $0xf8] sm:$0xff]  ;;  %1305 = vmatprep.subr.bf16.mxu1 %v1407_v4 }
  0x22   : > { %v328_v63 = vpack.c.bf16 %v1765_v60, %v1762_v59  ;;  %v331_v0 = vpack.c.bf16 %v1771_v62, %v1768_v61  ;;  %v1778_v1 = vld [vmem:[%s1622_s22 + $0xe0] sm:$0xff]  ;;  %v1781_v2 = vld [vmem:[%s1622_s22 + $0xf0] sm:$0xff]  ;;  %v1410_v7 = vld [vmem:[%s2040_s3 + $0x38] sm:$0xff]   ;;  %s1893_s22 = scalar_lea.vmem [#allocation2], %s1162_s15 }
  0x23   : > { %1228 = vmatpush3.bf16.msra.mxu0 %v1398_v14  ;;  %v330_v3 = vpack.c.bf16 %v1781_v2, %v1778_v1  ;;  %v1409_v6 = vld [vmem:[%s2040_s3 + $0x30] sm:$0xff]   ;;  %v1411_v8 = vld [vmem:[%s2042_s5] ss:$8 sps:$4 sm:$0xff]   ;;  %v1413_v9 = vld [vmem:[%s2042_s5 + $0x4] ss:$8 sps:$4 sm:$0xff]   ;;  %s1096_s8 = sshll.u32 %s1893_s22, 4  ;;  %s1988_s8 = int_to_ptr.vmem [resolvable:$true] %s1096_s8 }
  0x24   : > { %1229 = vmatprep.subr.bf16.mxu0 %v1399_v15  ;;  %1306 = vmatpush3.bf16.msra.mxu1 %v1407_v4  ;;  %v1416_v10 = vld [vmem:[%s2042_s5 + $0x14] ss:$8 sps:$4 sm:$0xff]   ;;  %v1414_v13 = vld [vmem:[%s2042_s5 + $0x10] ss:$8 sps:$4 sm:$0xff]   ;;  %v1419_v14 = vld [vmem:[%s2042_s5 + $0x24] ss:$8 sps:$4 sm:$0xff]   ;;  %p1442_p0 = scmp.lt.s32.totalorder %s1988_s8, %s1440_s18 }
  0x25   : > { %1307 = vmatprep.subr.bf16.mxu1 %v1408_v5  ;;  %v1417_v15 = vld [vmem:[%s2042_s5 + $0x20] ss:$8 sps:$4 sm:$0xff]   ;;  %s1435_s16 = scalar_lea.vmem %s1988_s8, 4096 }
  0x26   : > { %p1436_p11 = scmp.ne.s32.totalorder %s1988_s8, %s1435_s16  ;;  %p1443_p1 = scmp.lt.s32.totalorder %s1441_s19, %s1435_s16 }
  0x27   : > { %1230 = vmatpush3.bf16.msra.mxu0 %v1400_v16  ;;  %v1422_v16 = vld [vmem:[%s2042_s5 + $0x34] ss:$8 sps:$4 sm:$0xff]  }
  0x28   : > { %1231 = vmatprep.subr.bf16.mxu0 %v1401_v17  ;;  %1308 = vmatpush3.bf16.msra.mxu1 %v1408_v5  ;;  %v1420_v17 = vld [vmem:[%s2042_s5 + $0x30] ss:$8 sps:$4 sm:$0xff]   ;;  %p1437_p12 = pnand %p1436_p11, %p1581_p5  ;;  %p1444_p2 = por %p1443_p1, %p1442_p0 }
  0x29   : > { %1309 = vmatprep.subr.bf16.mxu1 %v1409_v6 }
  0x2a   : > { %p1438_p13 = pneg %p1437_p12 }
  0x2b   : > { %1232 = vmatpush3.bf16.msra.mxu0 %v1402_v18  ;;  %v1425_v18 = vld [vmem:[%s2042_s5 + $0x44] ss:$8 sps:$4 sm:$0xff]  }
  0x2c   : > { %1310 = vmatpush3.bf16.msra.mxu1 %v1409_v6  ;;  %860 = vmatprep.subr.bf16.mxu0 %v1413_v9  ;;  %p1445_p3 = pnand %p1444_p2, %p1438_p13 }
  0x2d   : > { %1311 = vmatprep.subr.bf16.mxu1 %v1410_v7 }
  0x2e   : > { %500 = vmatmul.mubr.bf16.vlgmr.msra.gmra.mrb[0].mxu0 %v316_v25  ;;  %v1426_v25 = vld [vmem:[%s2042_s5 + $0x50] ss:$8 sps:$4 sm:$0xff]  }
  0x2f   : > { %507 = vmatprep.mubr.bf16.mxu0 %v319_v27  ;;  %861 = vmatpush1.bf16.msra.mxu0 %v1411_v8 }
  0x30   : > { %1312 = vmatpush3.bf16.msra.mxu1 %v1410_v7  ;;  %862 = vmatprep.subr.bf16.mxu0 %v1416_v10 }
  0x31   : > { %1329 = vmatprep.subr.bf16.mxu1 %v1413_v9 }
  0x33   : > { %863 = vmatpush1.bf16.msra.mxu0 %v1414_v13 }
  0x34   : > { %864 = vmatprep.subr.bf16.mxu0 %v1419_v14 }
  0x36   : > { %508 = vmatmul.mubr.bf16.gmra.mrb[4].mxu0 %v318_v33 }
  0x37   : > { %515 = vmatprep.mubr.bf16.mxu0 %v321_v34  ;;  %865 = vmatpush1.bf16.msra.mxu0 %v1417_v15 }
  0x38   : > { %866 = vmatprep.subr.bf16.mxu0 %v1422_v16 }
  0x3b   : > { %867 = vmatpush1.bf16.msra.mxu0 %v1420_v17 }
  0x3c   : > { %868 = vmatprep.subr.bf16.mxu0 %v1425_v18 }
  0x3e   : > { %516 = vmatmul.mubr.bf16.gmra.mrb[8].mxu0 %v320_v39  ;;  %v1836_v39 = vld [vmem:[%s2039_s2] ss:$0 sm:$0xff] }
  0x3f   : > { %523 = vmatprep.mubr.bf16.mxu0 %v323_v40  ;;  %869 = vmatpush1.bf16.msra.mxu0 %v1423_v23 }
  0x40   : > { %870 = vmatprep.subr.bf16.mxu0 %v1428_v24 }
  0x43   : > { %871 = vmatpush1.bf16.msra.mxu0 %v1426_v25 }
  0x46   : > { %524 = vmatmul.mubr.bf16.gmra.mrb[12].mxu0 %v322_v45 }
  0x47   : > { %531 = vmatprep.mubr.bf16.mxu0 %v325_v46 }
  0x4e   : > { %532 = vmatmul.mubr.bf16.gmra.mrb[16].mxu0 %v324_v51 }
  0x4f   : > { %539 = vmatprep.mubr.bf16.mxu0 %v327_v52 }
  0x56   : > { %540 = vmatmul.mubr.bf16.gmra.mrb[20].mxu0 %v326_v57 }
  0x57   : > { %547 = vmatprep.mubr.bf16.mxu0 %v329_v58 }
  0x5e   : > { %548 = vmatmul.mubr.bf16.gmra.mrb[24].mxu0 %v328_v63 }
  0x5f   : > { %555 = vmatprep.mubr.bf16.mxu0 %v331_v0 }
  0x66   : > { %556 = vmatmul.mubr.bf16.gmra.mrb[28].mxu0 %v330_v3 }
 0x101   : > { %v1233_v26 = vpop.f32.mrb[0].mxu0 }
 0x102   : > { %v1234_v27 = vpop.f32.mrb[1].mxu0 }
 0x103   : > { %v1235_v30 = vadd.f32 %v1234_v27, %v1233_v26  ;;  %v1236_v33 = vpop.f32.mrb[2].mxu0 }
 0x104   : > { %v1237_v34 = vpop.f32.mrb[3].mxu0 }
 0x105   : > { %v1238_v40 = vadd.f32 %v1237_v34, %v1236_v33  ;;  %v502_v45 = vadd.f32 %v1235_v30, %v1836_v39 }
 0x107   : > { %v505_v46 = vadd.f32 %v1238_v40, %v1836_v39 }
 0x109   : > { %v1239_v51 = vpop.f32.mrb[4].mxu0  ;;  %v564_v52 = vpack.c.bf16 %v505_v46, %v502_v45 }
 0x10a   : > { %v1240_v57 = vpop.f32.mrb[5].mxu0 }
 0x10b   : > { %v1241_v58 = vadd.f32 %v1240_v57, %v1239_v51  ;;  %v1242_v63 = vpop.f32.mrb[6].mxu0  ;;  %1313 = vmatprep.mubr.bf16.mxu1 %v564_v52 }
 0x10c   : > { %v1243_v0 = vpop.f32.mrb[7].mxu0 }
 0x10d   : > { %v1244_v3 = vadd.f32 %v1243_v0, %v1242_v63  ;;  %v510_v4 = vadd.f32 %v1241_v58, %v1836_v39 }
 0x10f   : > { %v513_v5 = vadd.f32 %v1244_v3, %v1836_v39 }
 0x111   : > { %v1245_v6 = vpop.f32.mrb[8].mxu0  ;;  %v565_v7 = vpack.c.bf16 %v513_v5, %v510_v4 }
 0x112   : > { %v1246_v9 = vpop.f32.mrb[9].mxu0 }
 0x113   : > { %v1247_v26 = vadd.f32 %v1246_v9, %v1245_v6  ;;  %v1248_v27 = vpop.f32.mrb[10].mxu0  ;;  %1314 = vmatmul.mubr.bf16.vlgmr.msra.gmra.mrb[0].mxu1 %v565_v7 }
 0x114   : > { %v1249_v30 = vpop.f32.mrb[11].mxu0  ;;  %1337 = vmatpush1.bf16.msra.mxu1 %v1411_v8 }
 0x115   : > { %v1250_v33 = vadd.f32 %v1249_v30, %v1248_v27  ;;  %1330 = vmatprep.subr.bf16.mxu1 %v1416_v10  ;;  %v518_v34 = vadd.f32 %v1247_v26, %v1836_v39 }
 0x117   : > { %v521_v40 = vadd.f32 %v1250_v33, %v1836_v39 }
 0x118   : > { %1338 = vmatpush1.bf16.msra.mxu1 %v1414_v13 }
 0x119   : > { %v1251_v45 = vpop.f32.mrb[12].mxu0  ;;  %v566_v46 = vpack.c.bf16 %v521_v40, %v518_v34  ;;  %1331 = vmatprep.subr.bf16.mxu1 %v1419_v14 }
 0x11a   : > { %v1252_v51 = vpop.f32.mrb[13].mxu0 }
 0x11b   : > { %v1253_v52 = vadd.f32 %v1252_v51, %v1251_v45  ;;  %v1254_v57 = vpop.f32.mrb[14].mxu0  ;;  %1317 = vmatprep.mubr.bf16.mxu1 %v566_v46 }
 0x11c   : > { %v1255_v58 = vpop.f32.mrb[15].mxu0  ;;  %1339 = vmatpush1.bf16.msra.mxu1 %v1417_v15 }
 0x11d   : > { %v1256_v63 = vadd.f32 %v1255_v58, %v1254_v57  ;;  %1332 = vmatprep.subr.bf16.mxu1 %v1422_v16  ;;  %v526_v8 = vadd.f32 %v1253_v52, %v1836_v39 }
 0x11f   : > { %v529_v10 = vadd.f32 %v1256_v63, %v1836_v39 }
 0x120   : > { %1340 = vmatpush1.bf16.msra.mxu1 %v1420_v17 }
 0x121   : > { %v1257_v0 = vpop.f32.mrb[16].mxu0  ;;  %v567_v3 = vpack.c.bf16 %v529_v10, %v526_v8  ;;  %1333 = vmatprep.subr.bf16.mxu1 %v1425_v18 }
 0x122   : > { %v1258_v13 = vpop.f32.mrb[17].mxu0 }
 0x123   : > { %v1259_v4 = vadd.f32 %v1258_v13, %v1257_v0  ;;  %v1260_v5 = vpop.f32.mrb[18].mxu0  ;;  %1318 = vmatmul.mubr.bf16.gmra.mrb[4].mxu1 %v567_v3 }
 0x124   : > { %v1261_v14 = vpop.f32.mrb[19].mxu0  ;;  %1341 = vmatpush1.bf16.msra.mxu1 %v1423_v23 }
 0x125   : > { %v1262_v6 = vadd.f32 %v1261_v14, %v1260_v5  ;;  %1334 = vmatprep.subr.bf16.mxu1 %v1428_v24  ;;  %v534_v15 = vadd.f32 %v1259_v4, %v1836_v39 }
 0x127   : > { %v537_v16 = vadd.f32 %v1262_v6, %v1836_v39  ;;  %v1431_v6 = vld [vmem:[%s2042_s5 + $0x64] ss:$8 sps:$4 sm:$0xff]  }
 0x128   : > { %1342 = vmatpush1.bf16.msra.mxu1 %v1426_v25  ;;  %872 = vmatprep.subr.bf16.mxu0 %v1431_v6 }
 0x129   : > { %v1263_v7 = vpop.f32.mrb[20].mxu0  ;;  %v568_v9 = vpack.c.bf16 %v537_v16, %v534_v15  ;;  %v1429_v15 = vld [vmem:[%s2042_s5 + $0x60] ss:$8 sps:$4 sm:$0xff]   ;;  %1335 = vmatprep.subr.bf16.mxu1 %v1431_v6  ;;  %v1434_v16 = vld [vmem:[%s2042_s5 + $0x74] ss:$8 sps:$4 sm:$0xff]  }
 0x12a   : > { %v1264_v26 = vpop.f32.mrb[21].mxu0  ;;  %873 = vmatpush1.bf16.msra.mxu0 %v1429_v15 }
 0x12b   : > { %v1265_v17 = vadd.f32 %v1264_v26, %v1263_v7  ;;  %v1266_v27 = vpop.f32.mrb[22].mxu0  ;;  %1321 = vmatprep.mubr.bf16.mxu1 %v568_v9  ;;  %874 = vmatprep.subr.bf16.mxu0 %v1434_v16  ;;  %v1499_v7 = vmov 0   ;;  %v1183_v9 = vld [vmem:[%s2041_s4] ss:$0 sm:$0xff] }
 0x12c   : > { %v1267_v18 = vpop.f32.mrb[23].mxu0  ;;  %1343 = vmatpush1.bf16.msra.mxu1 %v1429_v15  ;;  %892 = vmatprep.mubr.bf16.mxu0 %v1499_v7 }
 0x12d   : > { %v1268_v30 = vadd.f32 %v1267_v18, %v1266_v27  ;;  %v542_v33 = vadd.f32 %v1265_v17, %v1836_v39  ;;  %1336 = vmatprep.subr.bf16.mxu1 %v1434_v16 }
 0x12f   : > { %v545_v34 = vadd.f32 %v1268_v30, %v1836_v39 }
 0x131   : > { %v1269_v23 = vpop.f32.mrb[24].mxu0  ;;  %v569_v40 = vpack.c.bf16 %v545_v34, %v542_v33 }
 0x132   : > { %v1270_v24 = vpop.f32.mrb[25].mxu0 }
 0x133   : > { %v1271_v45 = vadd.f32 %v1270_v24, %v1269_v23  ;;  %v1272_v46 = vpop.f32.mrb[26].mxu0  ;;  %1322 = vmatmul.mubr.bf16.gmra.mrb[8].mxu1 %v569_v40 }
 0x134   : > { %v1273_v51 = vpop.f32.mrb[27].mxu0 }
 0x135   : > { %v1274_v25 = vadd.f32 %v1273_v51, %v1272_v46  ;;  %v550_v52 = vadd.f32 %v1271_v45, %v1836_v39 }
 0x137   : > { %v553_v57 = vadd.f32 %v1274_v25, %v1836_v39 }
 0x139   : > { %v1275_v58 = vpop.f32.mrb[28].mxu0  ;;  %v570_v63 = vpack.c.bf16 %v553_v57, %v550_v52 }
 0x13a   : > { %v1276_v8 = vpop.f32.mrb[29].mxu0 }
 0x13b   : > { %v1277_v10 = vadd.f32 %v1276_v8, %v1275_v58  ;;  %v1278_v0 = vpop.f32.mrb[30].mxu0  ;;  %1325 = vmatprep.mubr.bf16.mxu1 %v570_v63 }
 0x13c   : > { %v1279_v3 = vpop.f32.mrb[31].mxu0 }
 0x13d   : > { %v1280_v13 = vadd.f32 %v1279_v3, %v1278_v0  ;;  %v558_v4 = vadd.f32 %v1277_v10, %v1836_v39 }
 0x13f   : > { %v561_v5 = vadd.f32 %v1280_v13, %v1836_v39  ;;  %v1432_v39 = vld [vmem:[%s2042_s5 + $0x70] ss:$8 sps:$4 sm:$0xff]  }
 0x140   : > { %875 = vmatpush1.bf16.msra.mxu0 %v1432_v39  ;;  %1344 = vmatpush1.bf16.msra.mxu1 %v1432_v39 }
 0x141   : > { %v571_v14 = vpack.c.bf16 %v561_v5, %v558_v4 }
 0x143   : > { %1326 = vmatmul.mubr.bf16.gmra.mrb[12].mxu1 %v571_v14 }
 0x144   : > { %912 = vmatprep.mubr.bf16.mxu1 %v1499_v7 }
 0x1e6   : > { %v1315_v26 = vpop.f32.mrb[0].mxu1 }
 0x1e7   : > { %v686_v17 = vadd.f32 %v1315_v26, %v1183_v9  ;;  %v677_v27 = vpop.f32.mrb[1].mxu1 }
 0x1e8   : > { %v678_v18 = vadd.f32 %v1183_v9, %v677_v27  ;;  %v1316_v30 = vpop.f32.mrb[2].mxu1 }
 0x1e9   : > { %v689_v33 = vadd.f32 %v1316_v30, %v1183_v9  ;;  %v680_v34 = vpop.f32.mrb[3].mxu1  ;;  %v742_v40 = vmax.f32 %v686_v17, 0.0 }
 0x1ea   : > { %v681_v23 = vadd.f32 %v1183_v9, %v680_v34  ;;  %v740_v45 = vmax.f32 %v678_v18, 0.0 }
 0x1eb   : > { %v743_v24 = vmax.f32 %v689_v33, 0.0 }
 0x1ec   : > { %v741_v46 = vmax.f32 %v681_v23, 0.0 }
 0x1ed   : > { %v757_v51 = vpack.c.bf16 %v743_v24, %v742_v40 }
 0x1ee   : > { %v756_v25 = vpack.c.bf16 %v741_v46, %v740_v45 }
 0x1f0   : > { %893 = vmatmul.mubr.bf16.vlgmr.msra.gmra.mrb[32].mxu0 %v756_v25 }
 0x1f1   : > { %902 = vmatprep.mubr.bf16.mxu0 %v1499_v7 }
 0x1f6   : > { %v1319_v52 = vpop.f32.mrb[4].mxu1 }
 0x1f7   : > { %v702_v57 = vadd.f32 %v1319_v52, %v1183_v9  ;;  %v693_v58 = vpop.f32.mrb[5].mxu1 }
 0x1f8   : > { %v694_v63 = vadd.f32 %v1183_v9, %v693_v58  ;;  %v1320_v8 = vpop.f32.mrb[6].mxu1  ;;  %903 = vmatmul.mubr.bf16.gmra.mrb[36].mxu0 %v757_v51 }
 0x1f9   : > { %v705_v10 = vadd.f32 %v1320_v8, %v1183_v9  ;;  %v696_v0 = vpop.f32.mrb[7].mxu1  ;;  %v746_v13 = vmax.f32 %v702_v57, 0.0 }
 0x1fa   : > { %v697_v3 = vadd.f32 %v1183_v9, %v696_v0  ;;  %v744_v5 = vmax.f32 %v694_v63, 0.0 }
 0x1fb   : > { %v747_v4 = vmax.f32 %v705_v10, 0.0 }
 0x1fc   : > { %v745_v14 = vmax.f32 %v697_v3, 0.0 }
 0x1fd   : > { %v759_v6 = vpack.c.bf16 %v747_v4, %v746_v13 }
 0x1fe   : > { %v758_v15 = vpack.c.bf16 %v745_v14, %v744_v5 }
 0x200   : > { %913 = vmatmul.mubr.bf16.vlgmr.msra.gmra.mrb[16].mxu1 %v758_v15 }
 0x201   : > { %922 = vmatprep.mubr.bf16.mxu1 %v1499_v7 }
 0x206   : > { %v1323_v16 = vpop.f32.mrb[8].mxu1 }
 0x207   : > { %v718_v39 = vadd.f32 %v1323_v16, %v1183_v9  ;;  %v709_v26 = vpop.f32.mrb[9].mxu1 }
 0x208   : > { %v710_v17 = vadd.f32 %v1183_v9, %v709_v26  ;;  %v1324_v27 = vpop.f32.mrb[10].mxu1  ;;  %923 = vmatmul.mubr.bf16.gmra.mrb[20].mxu1 %v759_v6  ;;  %v1007_v6 = vlaneseq }
 0x209   : > { %v721_v18 = vadd.f32 %v1324_v27, %v1183_v9  ;;  %v712_v30 = vpop.f32.mrb[11].mxu1  ;;  %932 = vmatprep.mubr.bf16.mxu1 %v1499_v7  ;;  %v750_v34 = vmax.f32 %v718_v39, 0.0  ;;  %v1005_v39 = vld [vmem:[%s2043_s6] sm:$0x3] }
 0x20a   : > { %v713_v33 = vadd.f32 %v1183_v9, %v712_v30  ;;  %v748_v40 = vmax.f32 %v710_v17, 0.0  ;;  %v1008_v15 = vshrl.u32 %v1007_v6, 7 }
 0x20b   : > { %v751_v23 = vmax.f32 %v721_v18, 0.0 }
 0x20c   : > { %v749_v24 = vmax.f32 %v713_v33, 0.0  ;;  %v1009_v16 = vsub.s32 0, %v1008_v15 }
 0x20d   : > { %v761_v45 = vpack.c.bf16 %v751_v23, %v750_v34 }
 0x20e   : > { %v760_v46 = vpack.c.bf16 %v749_v24, %v748_v40  ;;  %v1883_v26 = vrot.slane %v1005_v39, %v1009_v16 }
 0x210   : > { %933 = vmatmul.mubr.bf16.gmra.mrb[24].mxu1 %v760_v46 }
 0x211   : > { %942 = vmatprep.mubr.bf16.mxu1 %v1499_v7 }
 0x216   : > { %v1327_v51 = vpop.f32.mrb[12].mxu1 }
 0x217   : > { %v734_v25 = vadd.f32 %v1327_v51, %v1183_v9  ;;  %v725_v52 = vpop.f32.mrb[13].mxu1 }
 0x218   : > { %v726_v57 = vadd.f32 %v1183_v9, %v725_v52  ;;  %v1328_v58 = vpop.f32.mrb[14].mxu1  ;;  %943 = vmatmul.mubr.bf16.gmra.mrb[28].mxu1 %v761_v45 }
 0x219   : > { %v737_v63 = vadd.f32 %v1328_v58, %v1183_v9  ;;  %v728_v8 = vpop.f32.mrb[15].mxu1  ;;  %952 = vmatprep.mubr.bf16.mxu1 %v1499_v7  ;;  %v754_v0 = vmax.f32 %v734_v25, 0.0 }
 0x21a   : > { %v729_v10 = vadd.f32 %v1183_v9, %v728_v8  ;;  %v752_v13 = vmax.f32 %v726_v57, 0.0  ;;  %v1013_v9 = vsub.s32 1, %v1008_v15 }
 0x21b   : > { %v755_v3 = vmax.f32 %v737_v63, 0.0 }
 0x21c   : > { %v753_v4 = vmax.f32 %v729_v10, 0.0  ;;  %v1885_v27 = vrot.slane %v1005_v39, %v1013_v9 }
 0x21d   : > { %v763_v5 = vpack.c.bf16 %v755_v3, %v754_v0 }
 0x21e   : > { %v762_v14 = vpack.c.bf16 %v753_v4, %v752_v13 }
 0x220   : > { %953 = vmatmul.mubr.bf16.gmra.mrb[32].mxu1 %v762_v14 }
 0x221   : > { %962 = vmatprep.mubr.bf16.mxu1 %v1499_v7 }
 0x228   : > { %963 = vmatmul.mubr.bf16.gmra.mrb[36].mxu1 %v763_v5 }
 0x2c3   : > { %v894_v17 = vpop.f32.mrb[32].mxu0 }
 0x2c4   : > { %v973_v18 = vadd.f32 %v894_v17, %v1654_v19  ;;  %v896_v7 = vpop.f32.mrb[33].mxu0 }
 0x2c5   : > { %v974_v30 = vadd.f32 %v896_v7, %v1631_v11  ;;  %v898_v33 = vpop.f32.mrb[34].mxu0 }
 0x2c6   : > { %v1017_v34 = vadd.f32 %v1883_v26, %v973_v18  ;;  %v975_v23 = vadd.f32 %v898_v33, %v1657_v20  ;;  %v900_v40 = vpop.f32.mrb[35].mxu0 }
 0x2c7   : > { %v1018_v24 = vadd.f32 %v1885_v27, %v974_v30  ;;  %v976_v45 = vadd.f32 %v900_v40, %v1634_v12 }
 0x2c8   : > { %1049 = vst [vmem:[%s1893_s22] sm:$0xff] %v1017_v34  ;;  %v1019_v11 = vadd.f32 %v1883_v26, %v975_v23 }
 0x2c9   : > { %1050 = vst [vmem:[%s1893_s22 + $0x8] sm:$0xff] %v1018_v24  ;;  %v1020_v19 = vadd.f32 %v1885_v27, %v976_v45 }
 0x2ca   : > { %1051 = vst [vmem:[%s1893_s22 + $0x10] sm:$0xff] %v1019_v11 }
 0x2cb   : > { %1052 = vst [vmem:[%s1893_s22 + $0x18] sm:$0xff] %v1020_v19  ;;  %v904_v20 = vpop.f32.mrb[36].mxu0 }
 0x2cc   : > { %v977_v12 = vadd.f32 %v904_v20, %v1679_v28  ;;  %v906_v46 = vpop.f32.mrb[37].mxu0 }
 0x2cd   : > { %v978_v51 = vadd.f32 %v906_v46, %v1660_v21  ;;  %v908_v25 = vpop.f32.mrb[38].mxu0 }
 0x2ce   : > { %v1021_v52 = vadd.f32 %v1883_v26, %v977_v12  ;;  %v979_v57 = vadd.f32 %v908_v25, %v1682_v29  ;;  %v910_v58 = vpop.f32.mrb[39].mxu0 }
 0x2cf   : > { %v1022_v63 = vadd.f32 %v1885_v27, %v978_v51  ;;  %v980_v8 = vadd.f32 %v910_v58, %v1663_v22 }
 0x2d0   : > { %1053 = vst [vmem:[%s1893_s22 + $0x20] sm:$0xff] %v1021_v52  ;;  %v1023_v10 = vadd.f32 %v1883_v26, %v979_v57 }
 0x2d1   : > { %1054 = vst [vmem:[%s1893_s22 + $0x28] sm:$0xff] %v1022_v63  ;;  %v1024_v28 = vadd.f32 %v1885_v27, %v980_v8 }
 0x2d2   : > { %1055 = vst [vmem:[%s1893_s22 + $0x30] sm:$0xff] %v1023_v10 }
 0x2d3   : > { %1056 = vst [vmem:[%s1893_s22 + $0x38] sm:$0xff] %v1024_v28  ;;  %v914_v21 = vpop.f32.mrb[16].mxu1 }
 0x2d4   : > { %v981_v29 = vadd.f32 %v914_v21, %v1698_v35  ;;  %v916_v0 = vpop.f32.mrb[17].mxu1 }
 0x2d5   : > { %v982_v3 = vadd.f32 %v916_v0, %v1688_v31  ;;  %v918_v13 = vpop.f32.mrb[18].mxu1 }
 0x2d6   : > { %v1025_v22 = vadd.f32 %v1883_v26, %v981_v29  ;;  %v983_v4 = vadd.f32 %v918_v13, %v1701_v36  ;;  %v920_v5 = vpop.f32.mrb[19].mxu1 }
 0x2d7   : > { %v1026_v14 = vadd.f32 %v1885_v27, %v982_v3  ;;  %v984_v6 = vadd.f32 %v920_v5, %v1691_v32 }
 0x2d8   : > { %1057 = vst [vmem:[%s1893_s22 + $0x40] sm:$0xff] %v1025_v22  ;;  %v1027_v15 = vadd.f32 %v1883_v26, %v983_v4 }
 0x2d9   : > { %1058 = vst [vmem:[%s1893_s22 + $0x48] sm:$0xff] %v1026_v14  ;;  %v1028_v35 = vadd.f32 %v1885_v27, %v984_v6 }
 0x2da   : > { %1059 = vst [vmem:[%s1893_s22 + $0x50] sm:$0xff] %v1027_v15 }
 0x2db   : > { %1060 = vst [vmem:[%s1893_s22 + $0x58] sm:$0xff] %v1028_v35  ;;  %v924_v31 = vpop.f32.mrb[20].mxu1 }
 0x2dc   : > { %v985_v36 = vadd.f32 %v924_v31, %v1714_v41  ;;  %v926_v16 = vpop.f32.mrb[21].mxu1 }
 0x2dd   : > { %v986_v39 = vadd.f32 %v926_v16, %v1704_v37  ;;  %v928_v9 = vpop.f32.mrb[22].mxu1 }
 0x2de   : > { %v1029_v32 = vadd.f32 %v1883_v26, %v985_v36  ;;  %v987_v17 = vadd.f32 %v928_v9, %v1717_v42  ;;  %v930_v18 = vpop.f32.mrb[23].mxu1 }
 0x2df   : > { %v1030_v7 = vadd.f32 %v1885_v27, %v986_v39  ;;  %v988_v30 = vadd.f32 %v930_v18, %v1707_v38 }
 0x2e0   : > { %1061 = vst [vmem:[%s1893_s22 + $0x60] sm:$0xff] %v1029_v32  ;;  %v1031_v33 = vadd.f32 %v1883_v26, %v987_v17 }
 0x2e1   : > { %1062 = vst [vmem:[%s1893_s22 + $0x68] sm:$0xff] %v1030_v7  ;;  %v1032_v41 = vadd.f32 %v1885_v27, %v988_v30 }
 0x2e2   : > { %1063 = vst [vmem:[%s1893_s22 + $0x70] sm:$0xff] %v1031_v33 }
 0x2e3   : > { %1064 = vst [vmem:[%s1893_s22 + $0x78] sm:$0xff] %v1032_v41  ;;  %v934_v37 = vpop.f32.mrb[24].mxu1 }
 0x2e4   : > { %v989_v42 = vadd.f32 %v934_v37, %v1730_v47  ;;  %v936_v34 = vpop.f32.mrb[25].mxu1 }
 0x2e5   : > { %v990_v23 = vadd.f32 %v936_v34, %v1720_v43  ;;  %v938_v40 = vpop.f32.mrb[26].mxu1 }
 0x2e6   : > { %v1033_v38 = vadd.f32 %v1883_v26, %v989_v42  ;;  %v991_v24 = vadd.f32 %v938_v40, %v1733_v48  ;;  %v940_v45 = vpop.f32.mrb[27].mxu1 }
 0x2e7   : > { %v1034_v11 = vadd.f32 %v1885_v27, %v990_v23  ;;  %v992_v19 = vadd.f32 %v940_v45, %v1723_v44 }
 0x2e8   : > { %1065 = vst [vmem:[%s1893_s22 + $0x80] sm:$0xff] %v1033_v38  ;;  %v1035_v20 = vadd.f32 %v1883_v26, %v991_v24 }
 0x2e9   : > { %1066 = vst [vmem:[%s1893_s22 + $0x88] sm:$0xff] %v1034_v11  ;;  %v1036_v47 = vadd.f32 %v1885_v27, %v992_v19 }
 0x2ea   : > { %1067 = vst [vmem:[%s1893_s22 + $0x90] sm:$0xff] %v1035_v20 }
 0x2eb   : > { %1068 = vst [vmem:[%s1893_s22 + $0x98] sm:$0xff] %v1036_v47  ;;  %v944_v43 = vpop.f32.mrb[28].mxu1 }
 0x2ec   : > { %v993_v48 = vadd.f32 %v944_v43, %v1746_v53  ;;  %v946_v12 = vpop.f32.mrb[29].mxu1 }
 0x2ed   : > { %v994_v46 = vadd.f32 %v946_v12, %v1736_v49  ;;  %v948_v51 = vpop.f32.mrb[30].mxu1 }
 0x2ee   : > { %v1037_v44 = vadd.f32 %v1883_v26, %v993_v48  ;;  %v995_v25 = vadd.f32 %v948_v51, %v1749_v54  ;;  %v950_v52 = vpop.f32.mrb[31].mxu1 }
 0x2ef   : > { %v1038_v57 = vadd.f32 %v1885_v27, %v994_v46  ;;  %v996_v58 = vadd.f32 %v950_v52, %v1739_v50 }
 0x2f0   : > { %1069 = vst [vmem:[%s1893_s22 + $0xa0] sm:$0xff] %v1037_v44  ;;  %v1039_v63 = vadd.f32 %v1883_v26, %v995_v25 }
 0x2f1   : > { %1070 = vst [vmem:[%s1893_s22 + $0xa8] sm:$0xff] %v1038_v57  ;;  %v1040_v53 = vadd.f32 %v1885_v27, %v996_v58 }
 0x2f2   : > { %1071 = vst [vmem:[%s1893_s22 + $0xb0] sm:$0xff] %v1039_v63 }
 0x2f3   : > { %1072 = vst [vmem:[%s1893_s22 + $0xb8] sm:$0xff] %v1040_v53  ;;  %v954_v49 = vpop.f32.mrb[32].mxu1 }
 0x2f4   : > { %v997_v54 = vadd.f32 %v954_v49, %v1762_v59  ;;  %v956_v8 = vpop.f32.mrb[33].mxu1 }
 0x2f5   : > { %v998_v10 = vadd.f32 %v956_v8, %v1752_v55  ;;  %v958_v28 = vpop.f32.mrb[34].mxu1 }
 0x2f6   : > { %v1041_v50 = vadd.f32 %v1883_v26, %v997_v54  ;;  %v999_v21 = vadd.f32 %v958_v28, %v1765_v60  ;;  %v960_v29 = vpop.f32.mrb[35].mxu1 }
 0x2f7   : > { %v1042_v0 = vadd.f32 %v1885_v27, %v998_v10  ;;  %v1000_v3 = vadd.f32 %v960_v29, %v1755_v56 }
 0x2f8   : > { %1073 = vst [vmem:[%s1893_s22 + $0xc0] sm:$0xff] %v1041_v50  ;;  %v1043_v13 = vadd.f32 %v1883_v26, %v999_v21 }
 0x2f9   : > { %1074 = vst [vmem:[%s1893_s22 + $0xc8] sm:$0xff] %v1042_v0  ;;  %v1044_v59 = vadd.f32 %v1885_v27, %v1000_v3 }
 0x2fa   : > { %1075 = vst [vmem:[%s1893_s22 + $0xd0] sm:$0xff] %v1043_v13 }
 0x2fb   : > { %1076 = vst [vmem:[%s1893_s22 + $0xd8] sm:$0xff] %v1044_v59  ;;  %v964_v55 = vpop.f32.mrb[36].mxu1 }
 0x2fc   : > { %v1001_v22 = vadd.f32 %v964_v55, %v1778_v1  ;;  %v966_v60 = vpop.f32.mrb[37].mxu1 }
 0x2fd   : > { %v1002_v4 = vadd.f32 %v966_v60, %v1768_v61  ;;  %v968_v5 = vpop.f32.mrb[38].mxu1 }
 0x2fe   : > { %v1045_v56 = vadd.f32 %v1883_v26, %v1001_v22  ;;  %v1003_v14 = vadd.f32 %v968_v5, %v1781_v2  ;;  %v970_v6 = vpop.f32.mrb[39].mxu1 }
 0x2ff   : > { %v1046_v15 = vadd.f32 %v1885_v27, %v1002_v4  ;;  %v1004_v35 = vadd.f32 %v970_v6, %v1771_v62 }
 0x300   : > { %1077 = vst [vmem:[%s1893_s22 + $0xe0] sm:$0xff] %v1045_v56  ;;  %v1047_v1 = vadd.f32 %v1883_v26, %v1003_v14 }
 0x301   : > { %1078 = vst [vmem:[%s1893_s22 + $0xe8] sm:$0xff] %v1046_v15  ;;  %v1048_v61 = vadd.f32 %v1885_v27, %v1004_v35 }
 0x302   : > { %1079 = vst [vmem:[%s1893_s22 + $0xf0] sm:$0xff] %v1047_v1 }
 0x303   : > { %1080 = vst [vmem:[%s1893_s22 + $0xf8] sm:$0xff] %v1048_v61 }
 0x304   : > { %1448 = shalt.err (!%p1445_p3)
}
 0x305   : > { %s1449_s20 = scalar_lea.hbm %s1986_s14, 4096  ;;  %s1453_s15 = scalar_lea.hbm %s2044_s7, 8192 }
 0x306   : > { %p1450_p4 = scmp.ne.s32.totalorder %s1986_s14, %s1449_s20  ;;  %p1454_p9 = scmp.lt.u32.totalorder %s1986_s14, %s2044_s7 }
 0x307   : > { %p1455_p10 = scmp.lt.u32.totalorder %s1453_s15, %s1449_s20  ;;  %p1457_p12 = scmp.lt.u32.totalorder %s1449_s20, %s1986_s14 }
 0x308   : > { %p1451_p7 = pnand %p1450_p4, %p1581_p5 }
 0x309   : > { %p1456_p11 = por %p1455_p10, %p1454_p9 }
 0x30a   : > { %p1452_p8 = pneg %p1451_p7 }
 0x30b   : > { %p1458_p13 = por %p1457_p12, %p1456_p11 }
 0x30d   : > { %p1459_p0 = pnand %p1458_p13, %p1452_p8 }
 0x30f   : > { %1462 = shalt.err (!%p1459_p0)
}
 0x310   : > { %s1501_s9 = smov 256   ;;  %s1502_s13 = smov 16  }
 0x311   : > { %1345 = dma.vmem_to_hbm [thread:$0]  (%p1581_p5), %s1988_s8, 4096, %s1986_s14, %s1996_s28, %s1501_s9, %s1501_s9, %s1502_s13  }
 0x312 PF: > { %p1351_p1 = scmp.ge.s32.totalorder %s1497_s27, 2  ;;  %s1111_s16 = sand.u32 1, %s1485_s24  }
 0x313   : > { %s1112_s17 = scalar_lea.sflag [#allocation3], %s1111_s16 }
 0x314   : > { %p1348_p2 = pnand %p1351_p1, %p1585_p6 }
 0x316   : > { %1480 = dma.done.wait (!%p1348_p2), %s1112_s17, 4096  }
 0x317   : > { %1482 = vsyncadd (!%p1348_p2), %s1112_s17, 4294963200  ;;  %p17_p3 = scmp.ge.s32.totalorder %s1568_s30, 4   ;;  %s2047_s24 = smov %s1489_s25 }
 0x318   : > { %s2048_s25 = smov %s1493_s26  ;;  %s2049_s26 = smov %s1579_s10 }
 0x319   : > { %s2050_s27 = smov %s1568_s30  ;;  %19 = sbr.rel (!%p17_p3) target bundleno = 3 (0x3), region = 83 }
 0x320   :  { %1117 = vsyncpa [#allocation3], 1 }
 0x321   :  { %1119 = vsyncpa [#allocation3 + $0x1], 1 }

</bundles_post_ra>
